<compile_context>
chip_gen: v6e
topology: v6e:2x2x1
jax: 0.10.0
libtpu: 0.0.40
codegen_flags: <defaults>
</compile_context>

<pallas_src>
import functools

import jax
import jax.numpy as jnp
from jax import lax
from jax.experimental import pallas as pl
from jax.experimental.pallas import tpu as pltpu


def _round_up(a: int, b: int) -> int:
    return (a + b - 1) // b * b


def _pick_tiles(b_pad: int, d_pad: int, itemsize: int):
    """Pick (tm, tn) that divide b_pad, keep >=2 row tiles, and fit VMEM."""
    def largest(cap):
        t = 128
        for cand in (256, 512):
            if cand <= cap and b_pad % cand == 0:
                t = cand
        return t

    tm = largest(512)
    # Keep at least 2 row tiles so the "parallel" axis can shard across the
    # two TensorCores on v7x.
    if b_pad // tm < 2 and b_pad >= 256:
        tm = largest(b_pad // 2)
    tn = largest(512)

    # Conservative VMEM estimate: double-buffered matmul operands + f32/bool
    # per-tile temporaries + lane-wide accumulators.  Budget kept well under
    # v7x's 64 MiB physical VMEM.
    def vmem_est(tm_, tn_):
        return (2 * (tm_ + tn_) * d_pad * itemsize
                + 8 * tm_ * tn_ * 4
                + 3 * tm_ * 128 * 4)

    while vmem_est(tm, tn) > (24 << 20):
        if tn > 128:
            tn //= 2
        elif tm > 128:
            tm //= 2
        else:
            break
    return tm, tn


def _make_kernel(margin: float, tm: int, tn: int, b_real: int, b_pad: int):
    no_col_pad = (b_pad == b_real)  # static: column-validity mask not needed

    def kernel(sq_a_ref, sq_c_ref, lbl_a_ref, lbl_c_ref, xr_ref, xct_ref,
               out_ref, hp_ref, mn_ref, rmax_ref):
        i = pl.program_id(0)
        j = pl.program_id(1)

        # ---- init lane-wide online accumulators at the first column tile ----
        @pl.when(j == 0)
        def _():
            hp_ref[...] = jnp.zeros((tm, 128), jnp.float32)
            mn_ref[...] = jnp.full((tm, 128), jnp.inf, jnp.float32)
            rmax_ref[...] = jnp.zeros((tm, 128), jnp.float32)

        # ---- (tm, tn) Gram block on the MXU; candidate operand comes in
        #      pre-transposed so this is a plain ((1,),(0,)) contraction ----
        gram = lax.dot_general(
            xr_ref[...], xct_ref[...],
            dimension_numbers=(((1,), (0,)), ((), ())),
            preferred_element_type=jnp.float32)                  # (tm, tn)

        jcol = pl.multiple_of(j * tn, 128)
        sq_c = sq_c_ref[:, pl.ds(jcol, tn)]                      # (1, tn)
        lbl_c = lbl_c_ref[:, pl.ds(jcol, tn)]                    # (1, tn)

        # squared pairwise distances for this tile (no sqrt here)
        d2 = jnp.maximum(sq_a_ref[...] + sq_c - 2.0 * gram, 0.0)  # (tm, tn)

        # ---- masks from 1-D iotas; compares broadcast ----
        eq = lbl_a_ref[...] == lbl_c                              # (tm, tn)
        row_g = i * tm + lax.broadcasted_iota(jnp.int32, (tm, 1), 0)
        col_g = jcol + lax.broadcasted_iota(jnp.int32, (1, tn), 1)
        diag = row_g == col_g                                     # (tm, tn)
        not_diag = jnp.logical_not(diag)
        if no_col_pad:
            mask_pos = jnp.logical_and(eq, not_diag)
            mask_neg = jnp.logical_not(eq)
            valid = None
        else:
            valid = col_g < b_real                                # (1, tn)
            mask_pos = jnp.logical_and(jnp.logical_and(eq, not_diag), valid)
            mask_neg = jnp.logical_and(jnp.logical_not(eq), valid)

        # ---- elementwise (VALU) accumulator updates over 128-lane chunks ----
        for c in range(tn // 128):
            s = slice(c * 128, (c + 1) * 128)
            d2c = d2[:, s]                                        # (tm, 128)
            hp_ref[...] = jnp.maximum(
                hp_ref[...], jnp.where(mask_pos[:, s], d2c, 0.0))
            mn_ref[...] = jnp.minimum(
                mn_ref[...], jnp.where(mask_neg[:, s], d2c, jnp.inf))
            if no_col_pad:
                rmax_ref[...] = jnp.maximum(rmax_ref[...], d2c)
            else:
                rmax_ref[...] = jnp.maximum(
                    rmax_ref[...], jnp.where(valid[:, s], d2c, 0.0))

        # ---- finalize at the last column tile: one cross-lane reduce per
        #      accumulator + sqrt on (tm, 1) values only ----
        @pl.when(j == pl.num_programs(1) - 1)
        def _():
            hp2 = jnp.max(hp_ref[...], axis=1, keepdims=True)     # (tm, 1)
            mn2 = jnp.min(mn_ref[...], axis=1, keepdims=True)
            rm2 = jnp.max(rmax_ref[...], axis=1, keepdims=True)
            hp = jnp.sqrt(hp2)
            hn = jnp.sqrt(jnp.minimum(mn2, rm2))
            out_ref[...] = jnp.maximum(hp - hn + margin, 0.0)

    return kernel


@functools.partial(jax.jit, static_argnames=("margin",))
def batch_hard_triplet_loss(x, target, *, margin: float = 1.0):
    """x: (B, D) float embeddings, target: (B,) integer labels -> scalar loss."""
    B, D = x.shape
    b_pad = _round_up(B, 128)
    d_pad = _round_up(D, 128)
    tm, tn = _pick_tiles(b_pad, d_pad, x.dtype.itemsize)

    # zero-pad embeddings (zeros contribute nothing to gram / norms); padded
    # columns are masked inside the kernel, padded rows sliced off below.
    x_p = jnp.zeros((b_pad, d_pad), x.dtype).at[:B, :D].set(x)
    xt_p = x_p.T  # (d_pad, b_pad): candidate operand pre-transposed by XLA
    lbl = jnp.zeros((b_pad,), jnp.int32).at[:B].set(target.astype(jnp.int32))
    xf = x_p.astype(jnp.float32)
    sq = jnp.sum(xf * xf, axis=-1)

    grid = (b_pad // tm, b_pad // tn)
    kernel = _make_kernel(float(margin), tm, tn, B, b_pad)

    vmem_est = (2 * (tm + tn) * d_pad * x.dtype.itemsize
                + 8 * tm * tn * 4 + 3 * tm * 128 * 4 + 4 * b_pad * 4)
    vmem_limit = min(64 * 1024 * 1024,
                     max(32 * 1024 * 1024, int(1.5 * vmem_est)))

    per_row = pl.pallas_call(
        kernel,
        out_shape=jax.ShapeDtypeStruct((b_pad, 1), jnp.float32),
        grid_spec=pltpu.PrefetchScalarGridSpec(
            num_scalar_prefetch=0,
            grid=grid,
            in_specs=[
                pl.BlockSpec((tm, 1), lambda i, j: (i, 0)),       # ||x||^2 anchors
                pl.BlockSpec((1, b_pad), lambda i, j: (0, 0)),    # ||x||^2 all (loaded once)
                pl.BlockSpec((tm, 1), lambda i, j: (i, 0)),       # labels anchors
                pl.BlockSpec((1, b_pad), lambda i, j: (0, 0)),    # labels all (loaded once)
                pl.BlockSpec((tm, d_pad), lambda i, j: (i, 0)),   # x anchor rows
                pl.BlockSpec((d_pad, tn), lambda i, j: (0, j)),   # x^T candidate cols
            ],
            out_specs=pl.BlockSpec((tm, 1), lambda i, j: (i, 0)),
            scratch_shapes=[pltpu.VMEM((tm, 128), jnp.float32)] * 3,
        ),
        compiler_params=pltpu.CompilerParams(
            dimension_semantics=("parallel", "arbitrary"),
            vmem_limit_bytes=vmem_limit),
    )(
        sq.reshape(b_pad, 1),
        sq.reshape(1, b_pad),
        lbl.reshape(b_pad, 1),
        lbl.reshape(1, b_pad),
        x_p,
        xt_p,
    )
    # tiny finalization: mean over the real anchors only
    return jnp.mean(per_row[:B, 0])


def _reference(x, target, margin=1.0):
    # pure-JAX reference matching the PyTorch module
    d2 = jnp.sum((x[:, None, :] - x[None, :, :]) ** 2, axis=-1)
    d = jnp.sqrt(jnp.maximum(d2, 0.0))
    eq = target[None, :] == target[:, None]
    eye = jnp.eye(x.shape[0], dtype=bool)
    mask_ap = eq & ~eye
    mask_an = ~eq
    hp = jnp.max(jnp.where(mask_ap, d, 0.0), axis=1, keepdims=True)
    mx = jnp.max(d, axis=1, keepdims=True)
    an = d + mx * (1.0 - mask_an.astype(jnp.float32))
    hn = jnp.min(an, axis=1, keepdims=True)
    return jnp.mean(jnp.maximum(hp - hn + margin, 0.0))


if __name__ == "__main__":
    key = jax.random.PRNGKey(0)
    kx, kt = jax.random.split(key)
    B, D = 8, 32
    x = jax.random.normal(kx, (B, D), dtype=jnp.float32)
    target = jax.random.randint(kt, (B,), 0, 3, dtype=jnp.int32)

    loss = batch_hard_triplet_loss(x, target, margin=1.0)
    jax.block_until_ready(loss)

    ref = _reference(x, target, margin=1.0)
    assert jnp.allclose(loss, ref, atol=1e-5, rtol=1e-5), (loss, ref)
    print("KERNEL_OK")
</pallas_src>

<mosaic_0001>
module attributes {stable_mosaic.version = 11 : i64} {
  func.func @kernel(%arg0: i32, %arg1: i32, %arg2: memref<128x1xf32, #tpu.memory_space<vmem>>, %arg3: memref<1x128xf32, #tpu.memory_space<vmem>>, %arg4: memref<128x1xi32, #tpu.memory_space<vmem>>, %arg5: memref<1x128xi32, #tpu.memory_space<vmem>>, %arg6: memref<128x128xf32, #tpu.memory_space<vmem>>, %arg7: memref<128x128xf32, #tpu.memory_space<vmem>>, %arg8: memref<128x1xf32, #tpu.memory_space<vmem>>, %arg9: memref<128x128xf32, #tpu.memory_space<vmem>>, %arg10: memref<128x128xf32, #tpu.memory_space<vmem>>, %arg11: memref<128x128xf32, #tpu.memory_space<vmem>>) attributes {dimension_semantics = [#tpu.dimension_semantics<parallel>, #tpu.dimension_semantics<arbitrary>], iteration_bounds = array<i64: 1, 1>, scalar_prefetch = 0 : i64, scratch_operands = 3 : i64, tpu.core_type = #tpu.core_type<tc>, window_params = [{transform_indices = @transform_0, window_bounds = array<i64: 128, 1>}, {pipeline_mode = #tpu.pipeline_mode<synchronous>, transform_indices = @transform_1, window_bounds = array<i64: 1, 128>}, {transform_indices = @transform_2, window_bounds = array<i64: 128, 1>}, {pipeline_mode = #tpu.pipeline_mode<synchronous>, transform_indices = @transform_3, window_bounds = array<i64: 1, 128>}, {transform_indices = @transform_4, window_bounds = array<i64: 128, 128>}, {transform_indices = @transform_5, window_bounds = array<i64: 128, 128>}, {transform_indices = @transform_6, window_bounds = array<i64: 128, 1>}]} {
    %c0_i32 = arith.constant 0 : i32
    %0 = arith.cmpi eq, %arg1, %c0_i32 : i32
    %1 = arith.extui %0 : i1 to i32
    %c0_i32_0 = arith.constant 0 : i32
    %2 = arith.cmpi ne, %1, %c0_i32_0 : i32
    scf.if %2 {
      %cst_32 = arith.constant 0.000000e+00 : f32
      %64 = vector.broadcast %cst_32 : f32 to vector<128x128xf32>
      %c0_33 = arith.constant 0 : index
      %c0_34 = arith.constant 0 : index
      %65 = vector.load %arg9[%c0_33, %c0_34] : memref<128x128xf32, #tpu.memory_space<vmem>>, vector<128x128xf32>
      tpu.vector_store %arg9[%c0_33, %c0_34], %64 {strides = array<i32>} : memref<128x128xf32, #tpu.memory_space<vmem>>, vector<128x128xf32>,
      %cst_35 = arith.constant 0x7F800000 : f32
      %66 = vector.broadcast %cst_35 : f32 to vector<128x128xf32>
      %c0_36 = arith.constant 0 : index
      %c0_37 = arith.constant 0 : index
      %67 = vector.load %arg10[%c0_36, %c0_37] : memref<128x128xf32, #tpu.memory_space<vmem>>, vector<128x128xf32>
      tpu.vector_store %arg10[%c0_36, %c0_37], %66 {strides = array<i32>} : memref<128x128xf32, #tpu.memory_space<vmem>>, vector<128x128xf32>,
      %cst_38 = arith.constant 0.000000e+00 : f32
      %68 = vector.broadcast %cst_38 : f32 to vector<128x128xf32>
      %c0_39 = arith.constant 0 : index
      %c0_40 = arith.constant 0 : index
      %69 = vector.load %arg11[%c0_39, %c0_40] : memref<128x128xf32, #tpu.memory_space<vmem>>, vector<128x128xf32>
      tpu.vector_store %arg11[%c0_39, %c0_40], %68 {strides = array<i32>} : memref<128x128xf32, #tpu.memory_space<vmem>>, vector<128x128xf32>,
    } else {
    }
    %c0 = arith.constant 0 : index
    %c0_1 = arith.constant 0 : index
    %3 = vector.load %arg6[%c0, %c0_1] : memref<128x128xf32, #tpu.memory_space<vmem>>, vector<128x128xf32>
    %c0_2 = arith.constant 0 : index
    %c0_3 = arith.constant 0 : index
    %4 = vector.load %arg7[%c0_2, %c0_3] : memref<128x128xf32, #tpu.memory_space<vmem>>, vector<128x128xf32>
    %cst = arith.constant dense<0.000000e+00> : vector<128x128xf32>
    %5 = tpu.matmul %3, %4, %cst {dimension_numbers = #tpu.dot_dimension_numbers<[1], [0], [0], [1], [0, 0, 1, 1], [], []>} : vector<128x128xf32>, vector<128x128xf32>, vector<128x128xf32> -> vector<128x128xf32>
    %c128_i32 = arith.constant 128 : i32
    %6 = arith.muli %arg1, %c128_i32 : i32
    %7 = tpu.assume_multiple %6, 128 : i32
    %c0_4 = arith.constant 0 : index
    %8 = arith.index_cast %7 : i32 to index
    %9 = vector.load %arg3[%c0_4, %8] : memref<1x128xf32, #tpu.memory_space<vmem>>, vector<1x128xf32>
    %c0_5 = arith.constant 0 : index
    %10 = arith.index_cast %7 : i32 to index
    %11 = vector.load %arg5[%c0_5, %10] : memref<1x128xi32, #tpu.memory_space<vmem>>, vector<1x128xi32>
    %c0_6 = arith.constant 0 : index
    %c0_7 = arith.constant 0 : index
    %12 = vector.load %arg2[%c0_6, %c0_7] : memref<128x1xf32, #tpu.memory_space<vmem>>, vector<128x1xf32>
    %13 = vector.broadcast %12 : vector<128x1xf32> to vector<128x128xf32>
    %14 = vector.broadcast %9 : vector<1x128xf32> to vector<128x128xf32>
    %15 = arith.addf %13, %14 : vector<128x128xf32>
    %cst_8 = arith.constant 2.000000e+00 : f32
    %16 = vector.broadcast %cst_8 : f32 to vector<128x128xf32>
    %17 = arith.mulf %16, %5 : vector<128x128xf32>
    %18 = arith.subf %15, %17 : vector<128x128xf32>
    %cst_9 = arith.constant 0.000000e+00 : f32
    %19 = vector.broadcast %cst_9 : f32 to vector<128x128xf32>
    %20 = arith.maximumf %18, %19 : vector<128x128xf32>
    %c0_10 = arith.constant 0 : index
    %c0_11 = arith.constant 0 : index
    %21 = vector.load %arg4[%c0_10, %c0_11] : memref<128x1xi32, #tpu.memory_space<vmem>>, vector<128x1xi32>
    %22 = vector.broadcast %21 : vector<128x1xi32> to vector<128x128xi32>
    %23 = vector.broadcast %11 : vector<1x128xi32> to vector<128x128xi32>
    %24 = arith.cmpi eq, %22, %23 : vector<128x128xi32>
    %c128_i32_12 = arith.constant 128 : i32
    %25 = arith.muli %arg0, %c128_i32_12 : i32
    %26 = tpu.iota {dimensions = array<i32: 0>} : vector<128x1xi32>
    %27 = vector.broadcast %25 : i32 to vector<128x1xi32>
    %28 = arith.addi %27, %26 : vector<128x1xi32>
    %29 = tpu.iota {dimensions = array<i32: 1>} : vector<1x128xi32>
    %30 = vector.broadcast %7 : i32 to vector<1x128xi32>
    %31 = arith.addi %30, %29 : vector<1x128xi32>
    %32 = vector.broadcast %28 : vector<128x1xi32> to vector<128x128xi32>
    %33 = vector.broadcast %31 : vector<1x128xi32> to vector<128x128xi32>
    %34 = arith.cmpi eq, %32, %33 : vector<128x128xi32>
    %cst_13 = arith.constant dense<true> : vector<128x128xi1>
    %35 = arith.xori %34, %cst_13 : vector<128x128xi1>
    %c8_i32 = arith.constant 8 : i32
    %36 = vector.broadcast %c8_i32 : i32 to vector<1x128xi32>
    %37 = arith.cmpi slt, %31, %36 : vector<1x128xi32>
    %38 = arith.andi %24, %35 : vector<128x128xi1>
    %39 = vector.broadcast %37 : vector<1x128xi1> to vector<128x128xi1>
    %40 = arith.andi %38, %39 : vector<128x128xi1>
    %cst_14 = arith.constant dense<true> : vector<128x128xi1>
    %41 = arith.xori %24, %cst_14 : vector<128x128xi1>
    %42 = vector.broadcast %37 : vector<1x128xi1> to vector<128x128xi1>
    %43 = arith.andi %41, %42 : vector<128x128xi1>
    %c0_15 = arith.constant 0 : index
    %c0_16 = arith.constant 0 : index
    %44 = vector.load %arg9[%c0_15, %c0_16] : memref<128x128xf32, #tpu.memory_space<vmem>>, vector<128x128xf32>
    %cst_17 = arith.constant 0.000000e+00 : f32
    %45 = vector.broadcast %cst_17 : f32 to vector<128x128xf32>
    %46 = arith.select %40, %20, %45 : vector<128x128xi1>, vector<128x128xf32>
    %47 = arith.maximumf %44, %46 : vector<128x128xf32>
    %c0_18 = arith.constant 0 : index
    %c0_19 = arith.constant 0 : index
    %48 = vector.load %arg9[%c0_18, %c0_19] : memref<128x128xf32, #tpu.memory_space<vmem>>, vector<128x128xf32>
    tpu.vector_store %arg9[%c0_18, %c0_19], %47 {strides = array<i32>} : memref<128x128xf32, #tpu.memory_space<vmem>>, vector<128x128xf32>,
    %c0_20 = arith.constant 0 : index
    %c0_21 = arith.constant 0 : index
    %49 = vector.load %arg10[%c0_20, %c0_21] : memref<128x128xf32, #tpu.memory_space<vmem>>, vector<128x128xf32>
    %cst_22 = arith.constant 0x7F800000 : f32
    %50 = vector.broadcast %cst_22 : f32 to vector<128x128xf32>
    %51 = arith.select %43, %20, %50 : vector<128x128xi1>, vector<128x128xf32>
    %52 = arith.minimumf %49, %51 : vector<128x128xf32>
    %c0_23 = arith.constant 0 : index
    %c0_24 = arith.constant 0 : index
    %53 = vector.load %arg10[%c0_23, %c0_24] : memref<128x128xf32, #tpu.memory_space<vmem>>, vector<128x128xf32>
    tpu.vector_store %arg10[%c0_23, %c0_24], %52 {strides = array<i32>} : memref<128x128xf32, #tpu.memory_space<vmem>>, vector<128x128xf32>,
    %c0_25 = arith.constant 0 : index
    %c0_26 = arith.constant 0 : index
    %54 = vector.load %arg11[%c0_25, %c0_26] : memref<128x128xf32, #tpu.memory_space<vmem>>, vector<128x128xf32>
    %cst_27 = arith.constant 0.000000e+00 : f32
    %55 = vector.shape_cast %37 : vector<1x128xi1> to vector<1x128xi1>
    %56 = vector.broadcast %55 : vector<1x128xi1> to vector<128x128xi1>
    %57 = vector.broadcast %cst_27 : f32 to vector<128x128xf32>
    %58 = arith.select %56, %20, %57 : vector<128x128xi1>, vector<128x128xf32>
    %59 = arith.maximumf %54, %58 : vector<128x128xf32>
    %c0_28 = arith.constant 0 : index
    %c0_29 = arith.constant 0 : index
    %60 = vector.load %arg11[%c0_28, %c0_29] : memref<128x128xf32, #tpu.memory_space<vmem>>, vector<128x128xf32>
    tpu.vector_store %arg11[%c0_28, %c0_29], %59 {strides = array<i32>} : memref<128x128xf32, #tpu.memory_space<vmem>>, vector<128x128xf32>,
    %c0_i32_30 = arith.constant 0 : i32
    %61 = arith.cmpi eq, %arg1, %c0_i32_30 : i32
    %62 = arith.extui %61 : i1 to i32
    %c0_i32_31 = arith.constant 0 : i32
    %63 = arith.cmpi ne, %62, %c0_i32_31 : i32
    scf.if %63 {
      %c0_32 = arith.constant 0 : index
      %c0_33 = arith.constant 0 : index
      %64 = vector.load %arg9[%c0_32, %c0_33] : memref<128x128xf32, #tpu.memory_space<vmem>>, vector<128x128xf32>
      %cst_34 = arith.constant dense<0xFF800000> : vector<128xf32>
      %65 = vector.multi_reduction <maximumf>, %64, %cst_34 [1] : vector<128x128xf32> to vector<128xf32>
      %66 = vector.shape_cast %65 : vector<128xf32> to vector<128x1xf32>
      %c0_35 = arith.constant 0 : index
      %c0_36 = arith.constant 0 : index
      %67 = vector.load %arg10[%c0_35, %c0_36] : memref<128x128xf32, #tpu.memory_space<vmem>>, vector<128x128xf32>
      %cst_37 = arith.constant dense<0x7F800000> : vector<128xf32>
      %68 = vector.multi_reduction <minimumf>, %67, %cst_37 [1] : vector<128x128xf32> to vector<128xf32>
      %69 = vector.shape_cast %68 : vector<128xf32> to vector<128x1xf32>
      %c0_38 = arith.constant 0 : index
      %c0_39 = arith.constant 0 : index
      %70 = vector.load %arg11[%c0_38, %c0_39] : memref<128x128xf32, #tpu.memory_space<vmem>>, vector<128x128xf32>
      %cst_40 = arith.constant dense<0xFF800000> : vector<128xf32>
      %71 = vector.multi_reduction <maximumf>, %70, %cst_40 [1] : vector<128x128xf32> to vector<128xf32>
      %72 = vector.shape_cast %71 : vector<128xf32> to vector<128x1xf32>
      %73 = math.sqrt %66 : vector<128x1xf32>
      %74 = arith.minimumf %69, %72 : vector<128x1xf32>
      %75 = math.sqrt %74 : vector<128x1xf32>
      %76 = arith.subf %73, %75 : vector<128x1xf32>
      %cst_41 = arith.constant 1.000000e+00 : f32
      %77 = vector.broadcast %cst_41 : f32 to vector<128x1xf32>
      %78 = arith.addf %76, %77 : vector<128x1xf32>
      %cst_42 = arith.constant 0.000000e+00 : f32
      %79 = vector.broadcast %cst_42 : f32 to vector<128x1xf32>
      %80 = arith.maximumf %78, %79 : vector<128x1xf32>
      %c0_43 = arith.constant 0 : index
      %c0_44 = arith.constant 0 : index
      %81 = vector.load %arg8[%c0_43, %c0_44] : memref<128x1xf32, #tpu.memory_space<vmem>>, vector<128x1xf32>
      tpu.vector_store %arg8[%c0_43, %c0_44], %80 {strides = array<i32>} : memref<128x1xf32, #tpu.memory_space<vmem>>, vector<128x1xf32>,
    } else {
    }
    return
  }
  func.func @transform_0(%arg0: i32, %arg1: i32) -> (i32, i32) {
    %c0_i32 = arith.constant 0 : i32
    %c0_i32_0 = arith.constant 0 : i32
    return %arg0, %c0_i32 : i32, i32
  }
  func.func @transform_1(%arg0: i32, %arg1: i32) -> (i32, i32) {
    %c0_i32 = arith.constant 0 : i32
    %c0_i32_0 = arith.constant 0 : i32
    %c0_i32_1 = arith.constant 0 : i32
    return %c0_i32, %c0_i32_0 : i32, i32
  }
  func.func @transform_2(%arg0: i32, %arg1: i32) -> (i32, i32) {
    %c0_i32 = arith.constant 0 : i32
    %c0_i32_0 = arith.constant 0 : i32
    return %arg0, %c0_i32 : i32, i32
  }
  func.func @transform_3(%arg0: i32, %arg1: i32) -> (i32, i32) {
    %c0_i32 = arith.constant 0 : i32
    %c0_i32_0 = arith.constant 0 : i32
    %c0_i32_1 = arith.constant 0 : i32
    return %c0_i32, %c0_i32_0 : i32, i32
  }
  func.func @transform_4(%arg0: i32, %arg1: i32) -> (i32, i32) {
    %c0_i32 = arith.constant 0 : i32
    %c0_i32_0 = arith.constant 0 : i32
    return %arg0, %c0_i32 : i32, i32
  }
  func.func @transform_5(%arg0: i32, %arg1: i32) -> (i32, i32) {
    %c0_i32 = arith.constant 0 : i32
    %c0_i32_0 = arith.constant 0 : i32
    return %c0_i32, %arg1 : i32, i32
  }
  func.func @transform_6(%arg0: i32, %arg1: i32) -> (i32, i32) {
    %c0_i32 = arith.constant 0 : i32
    %c0_i32_0 = arith.constant 0 : i32
    return %arg0, %c0_i32 : i32, i32
  }
}

</mosaic_0001>

<bundles_post_ra>
// kernel: batch_hard_triplet_loss.1
= control target key start
LH: loop header
LB: loop body
LE: loop exit
PB: predicated region body
PF: predicated region fallthrough
CT: control target
= control target key end

     0   :  { %v1487_v0 = vmov 0   ;;  %v510_v52 = vlaneseq  ;;  %vm2858_vm6 = vmmov 1   ;;  %s2838_s5 = inlined_call_operand.vmem [shape: f32[128,128], index: 5, kind: input, shape index: {}]   ;;  %s2839_s0 = inlined_call_operand.vmem [shape: f32[128,1], index: 0, kind: input, shape index: {}]   ;;  %s2840_s4 = inlined_call_operand.vmem [shape: f32[128,128], index: 4, kind: input, shape index: {}]   ;;  %s2841_s2 = inlined_call_operand.vmem [shape: s32[128,1], index: 2, kind: input, shape index: {}]   ;;  %s2842_s1 = inlined_call_operand.vmem [shape: f32[1,128], index: 1, kind: input, shape index: {}]   ;;  %s2843_s3 = inlined_call_operand.vmem [shape: s32[1,128], index: 3, kind: input, shape index: {}]   ;;  %s2844_s6 = inlined_call_operand.vmem [shape: f32[128,1], index: 6, kind: output, shape index: {}]  }
   0x1   :  { %1421 = vset.pattern.permute.xlu0 %v1487_v0  ;;  %v106_v1 = vld [vmem:[%s2838_s5 + $0x78] sm:$0xff]  ;;  %v259_v2 = vld [vmem:[%s2839_s0] sm:$0xff]  ;;  %v105_v3 = vld [vmem:[%s2838_s5 + $0x70] sm:$0xff]  ;;  %1422 = vset.pattern.permute.xlu1 %v1487_v0 }
   0x2   :  { %1331 = vmatprep.subr.mxu0 %v106_v1  ;;  %1387 = vmatprep.subr.mxu1 %v106_v1  ;;  %v104_v4 = vld [vmem:[%s2838_s5 + $0x68] sm:$0xff]  ;;  %v261_v5 = vld [vmem:[%s2839_s0 + $0x10] sm:$0xff]  ;;  %v103_v7 = vld [vmem:[%s2838_s5 + $0x60] sm:$0xff]  ;;  %v1689_v57 = vshrl.u32 %v510_v52, 7  ;;  %v1694_v59 = vand.u32 127, %v510_v52 }
   0x3   :  { %277 = vperm.xlu0 %1421, %v259_v2   ;;  %1332 = vmatpush3.msra.mxu0 %v106_v1  ;;  %v260_v6 = vld [vmem:[%s2839_s0 + $0x8] sm:$0xff]  ;;  %v102_v8 = vld [vmem:[%s2838_s5 + $0x58] sm:$0xff]  ;;  %v263_v10 = vld [vmem:[%s2839_s0 + $0x20] sm:$0xff] }
   0x4   :  { %1403 = vmatpush3.msra.mxu1 %v106_v1  ;;  %1333 = vmatprep.subr.mxu0 %v105_v3  ;;  %v262_v9 = vld [vmem:[%s2839_s0 + $0x18] sm:$0xff]  ;;  %v101_v11 = vld [vmem:[%s2838_s5 + $0x50] sm:$0xff]  ;;  %v100_v12 = vld [vmem:[%s2838_s5 + $0x48] sm:$0xff]  ;;  %v517_v61 = vadd.s32 48, %v1689_v57  ;;  %v518_v0 = vadd.s32 56, %v1689_v57  ;;  %v515_v52 = vadd.s32 32, %v1689_v57 }
   0x5   :  { %1388 = vmatprep.subr.mxu1 %v105_v3  ;;  %1334 = vmatpush3.msra.mxu0 %v105_v3  ;;  %v264_v13 = vld [vmem:[%s2839_s0 + $0x28] sm:$0xff]  ;;  %v265_v14 = vld [vmem:[%s2839_s0 + $0x30] sm:$0xff]  ;;  %v99_v15 = vld [vmem:[%s2838_s5 + $0x40] sm:$0xff] }
   0x6   :  { %1404 = vmatpush3.msra.mxu1 %v105_v3  ;;  %1335 = vmatprep.subr.mxu0 %v104_v4  ;;  %v98_v16 = vld [vmem:[%s2838_s5 + $0x38] sm:$0xff]  ;;  %v267_v18 = vld [vmem:[%s2839_s0 + $0x40] sm:$0xff]  ;;  %v97_v19 = vld [vmem:[%s2838_s5 + $0x30] sm:$0xff]  ;;  %vm554_vm0 = vcmp.eq.s32.totalorder %v517_v61, %v1694_v59  ;;  %vm555_vm1 = vcmp.eq.s32.totalorder %v518_v0, %v1694_v59 }
   0x7   :  { %1389 = vmatprep.subr.mxu1 %v104_v4  ;;  %287 = vperm.xlu1 %1422, %v261_v5   ;;  %v266_v17 = vld [vmem:[%s2839_s0 + $0x38] sm:$0xff]  ;;  %v96_v20 = vld [vmem:[%s2838_s5 + $0x28] sm:$0xff]  ;;  %v269_v22 = vld [vmem:[%s2839_s0 + $0x50] sm:$0xff]  ;;  %v1722_v5 = vadd.s32 96, %v1689_v57 }
   0x8   :  { %282 = vperm.xlu0 %1421, %v260_v6   ;;  %1336 = vmatpush3.msra.mxu0 %v104_v4  ;;  %v268_v21 = vld [vmem:[%s2839_s0 + $0x48] sm:$0xff]  ;;  %v95_v23 = vld [vmem:[%s2838_s5 + $0x20] sm:$0xff]  ;;  %v94_v24 = vld [vmem:[%s2838_s5 + $0x18] sm:$0xff] }
   0x9   :  { %1405 = vmatpush3.msra.mxu1 %v104_v4  ;;  %1337 = vmatprep.subr.mxu0 %v103_v7  ;;  %v270_v25 = vld [vmem:[%s2839_s0 + $0x58] sm:$0xff]  ;;  %v271_v26 = vld [vmem:[%s2839_s0 + $0x60] sm:$0xff]  ;;  %v93_v27 = vld [vmem:[%s2838_s5 + $0x10] sm:$0xff] }
   0xa   :  { %1390 = vmatprep.subr.mxu1 %v103_v7  ;;  %1338 = vmatpush3.msra.mxu0 %v103_v7  ;;  %v92_v28 = vld [vmem:[%s2838_s5 + $0x8] sm:$0xff]  ;;  %v273_v30 = vld [vmem:[%s2839_s0 + $0x70] sm:$0xff]  ;;  %v91_v31 = vld [vmem:[%s2838_s5] sm:$0xff] }
   0xb   :  { %1406 = vmatpush3.msra.mxu1 %v103_v7  ;;  %1339 = vmatprep.subr.mxu0 %v102_v8  ;;  %v272_v29 = vld [vmem:[%s2839_s0 + $0x68] sm:$0xff]  ;;  %v75_v32 = vld [vmem:[%s2840_s4] sm:$0xff]  ;;  %v274_v36 = vld [vmem:[%s2839_s0 + $0x78] sm:$0xff]  ;;  %v525_v7 = vadd.s32 112, %v1689_v57 }
   0xc   :  { %1391 = vmatprep.subr.mxu1 %v102_v8  ;;  %292 = vperm.xlu1 %1422, %v262_v9   ;;  %v83_v33 = vld [vmem:[%s2840_s4 + $0x40] sm:$0xff]  ;;  %v76_v34 = vld [vmem:[%s2840_s4 + $0x8] sm:$0xff]  ;;  %v77_v38 = vld [vmem:[%s2840_s4 + $0x10] sm:$0xff] }
   0xd   :  { %297 = vperm.xlu0 %1421, %v263_v10   ;;  %1340 = vmatpush3.msra.mxu0 %v102_v8  ;;  %v84_v35 = vld [vmem:[%s2840_s4 + $0x48] sm:$0xff]  ;;  %v425_v37 = vld [vmem:[%s2841_s2] sm:$0xff]  ;;  %v85_v39 = vld [vmem:[%s2840_s4 + $0x50] sm:$0xff]  ;;  %vm562_vm3 = vcmp.eq.s32.totalorder %v525_v7, %v1694_v59 }
   0xe   :  { %1407 = vmatpush3.msra.mxu1 %v102_v8  ;;  %1341 = vmatprep.subr.mxu0 %v101_v11  ;;  %v78_v40 = vld [vmem:[%s2840_s4 + $0x18] sm:$0xff]  ;;  %v426_v42 = vld [vmem:[%s2841_s2 + $0x8] sm:$0xff]  ;;  %v427_v43 = vld [vmem:[%s2841_s2 + $0x10] sm:$0xff]  ;;  %v526_v8 = vadd.s32 120, %v1689_v57 }
   0xf   :  { %1392 = vmatprep.subr.mxu1 %v101_v11  ;;  %1342 = vmatpush3.msra.mxu0 %v101_v11  ;;  %v86_v41 = vld [vmem:[%s2840_s4 + $0x58] sm:$0xff]  ;;  %v79_v44 = vld [vmem:[%s2840_s4 + $0x20] sm:$0xff]  ;;  %v80_v46 = vld [vmem:[%s2840_s4 + $0x28] sm:$0xff] }
  0x10   :  { %1408 = vmatpush3.msra.mxu1 %v101_v11  ;;  %1343 = vmatprep.subr.mxu0 %v100_v12  ;;  %v87_v45 = vld [vmem:[%s2840_s4 + $0x60] sm:$0xff]  ;;  %v88_v47 = vld [vmem:[%s2840_s4 + $0x68] sm:$0xff]  ;;  %v428_v48 = vld [vmem:[%s2841_s2 + $0x18] sm:$0xff]  ;;  %vm563_vm4 = vcmp.eq.s32.totalorder %v526_v8, %v1694_v59 }
  0x11   :  { %1393 = vmatprep.subr.mxu1 %v100_v12  ;;  %302 = vperm.xlu1 %1422, %v264_v13   ;;  %v429_v49 = vld [vmem:[%s2841_s2 + $0x20] sm:$0xff]  ;;  %v81_v50 = vld [vmem:[%s2840_s4 + $0x30] sm:$0xff]  ;;  %v82_v53 = vld [vmem:[%s2840_s4 + $0x38] sm:$0xff] }
  0x12   :  { %307 = vperm.xlu0 %1421, %v265_v14   ;;  %1344 = vmatpush3.msra.mxu0 %v100_v12  ;;  %v89_v51 = vld [vmem:[%s2840_s4 + $0x70] sm:$0xff]  ;;  %v90_v54 = vld [vmem:[%s2840_s4 + $0x78] sm:$0xff]  ;;  %v430_v55 = vld [vmem:[%s2841_s2 + $0x28] sm:$0xff] }
  0x13   :  { %1409 = vmatpush3.msra.mxu1 %v100_v12  ;;  %1345 = vmatprep.subr.mxu0 %v99_v15  ;;  %v431_v56 = vld [vmem:[%s2841_s2 + $0x30] sm:$0xff]  ;;  %v432_v58 = vld [vmem:[%s2841_s2 + $0x38] sm:$0xff]  ;;  %v433_v60 = vld [vmem:[%s2841_s2 + $0x40] sm:$0xff] }
  0x14   :  { %1394 = vmatprep.subr.mxu1 %v99_v15  ;;  %1346 = vmatpush3.msra.mxu0 %v99_v15  ;;  %v434_v62 = vld [vmem:[%s2841_s2 + $0x48] sm:$0xff]  ;;  %v435_v63 = vld [vmem:[%s2841_s2 + $0x50] sm:$0xff]  ;;  %v436_v1 = vld [vmem:[%s2841_s2 + $0x58] sm:$0xff] }
  0x15   :  { %1410 = vmatpush3.msra.mxu1 %v99_v15  ;;  %1347 = vmatprep.subr.mxu0 %v98_v16  ;;  %v437_v2 = vld [vmem:[%s2841_s2 + $0x60] sm:$0xff]  ;;  %v438_v3 = vld [vmem:[%s2841_s2 + $0x68] sm:$0xff]  ;;  %v439_v4 = vld [vmem:[%s2841_s2 + $0x70] sm:$0xff] }
  0x16   :  { %1395 = vmatprep.subr.mxu1 %v98_v16  ;;  %312 = vperm.xlu1 %1422, %v266_v17   ;;  %v440_v6 = vld [vmem:[%s2841_s2 + $0x78] sm:$0xff]  ;;  %v1744_v14 = vld [vmem:[%s2842_s1] ss:$0 sm:$0xff]  ;;  %vm570_vm7 = vmxor %vm554_vm0, %vm2858_vm6 }
  0x17   :  { %317 = vperm.xlu0 %1421, %v267_v18   ;;  %1348 = vmatpush3.msra.mxu0 %v98_v16  ;;  %vm571_vm8 = vmxor %vm555_vm1, %vm2858_vm6 }
  0x18   :  { %1411 = vmatpush3.msra.mxu1 %v98_v16  ;;  %1349 = vmatprep.subr.mxu0 %v97_v19  ;;  %vm578_vm12 = vmxor %vm562_vm3, %vm2858_vm6  ;;  %vm548_vm3 = vcmp.eq.s32.totalorder %v1689_v57, %v1694_v59 }
  0x19   :  { %1396 = vmatprep.subr.mxu1 %v97_v19  ;;  %1350 = vmatpush3.msra.mxu0 %v97_v19  ;;  %vm579_vm14 = vmxor %vm563_vm4, %vm2858_vm6 }
  0x1a   :  { %1412 = vmatpush3.msra.mxu1 %v97_v19  ;;  %1351 = vmatprep.subr.mxu0 %v96_v20 }
  0x1b   :  { %1397 = vmatprep.subr.mxu1 %v96_v20  ;;  %322 = vperm.xlu1 %1422, %v268_v21  }
  0x1c   :  { %327 = vperm.xlu0 %1421, %v269_v22   ;;  %1352 = vmatpush3.msra.mxu0 %v96_v20 }
  0x1d   :  { %1413 = vmatpush3.msra.mxu1 %v96_v20  ;;  %1353 = vmatprep.subr.mxu0 %v95_v23 }
  0x1e   :  { %1398 = vmatprep.subr.mxu1 %v95_v23  ;;  %1354 = vmatpush3.msra.mxu0 %v95_v23 }
  0x1f   :  { %1414 = vmatpush3.msra.mxu1 %v95_v23  ;;  %1355 = vmatprep.subr.mxu0 %v94_v24 }
  0x20   :  { %1399 = vmatprep.subr.mxu1 %v94_v24  ;;  %332 = vperm.xlu1 %1422, %v270_v25  }
  0x21   :  { %337 = vperm.xlu0 %1421, %v271_v26   ;;  %1356 = vmatpush3.msra.mxu0 %v94_v24 }
  0x22   :  { %1415 = vmatpush3.msra.mxu1 %v94_v24  ;;  %1357 = vmatprep.subr.mxu0 %v93_v27 }
  0x23   :  { %1400 = vmatprep.subr.mxu1 %v93_v27  ;;  %1358 = vmatpush3.msra.mxu0 %v93_v27 }
  0x24   :  { %1416 = vmatpush3.msra.mxu1 %v93_v27  ;;  %1359 = vmatprep.subr.mxu0 %v92_v28 }
  0x25   :  { %1401 = vmatprep.subr.mxu1 %v92_v28  ;;  %342 = vperm.xlu1 %1422, %v272_v29  }
  0x26   :  { %347 = vperm.xlu0 %1421, %v273_v30   ;;  %1360 = vmatpush3.msra.mxu0 %v92_v28 }
  0x27   :  { %1417 = vmatpush3.msra.mxu1 %v92_v28  ;;  %1361 = vmatprep.subr.mxu0 %v91_v31 }
  0x28   :  { %1402 = vmatprep.subr.mxu1 %v91_v31  ;;  %1362 = vmatpush3.msra.mxu0 %v91_v31 }
  0x29   :  { %1418 = vmatpush3.msra.mxu1 %v91_v31  ;;  %1363 = vmatprep.mubr.f32.mxu0 %v75_v32 }
  0x2a   :  { %1375 = vmatprep.mubr.f32.mxu1 %v83_v33  ;;  %1364 = vmatmul.mubr.f32.vlgmr.msra.gmra.mxu0 %v76_v34  ;;  %v1782_v34 = vld [vmem:[%s2843_s3] ss:$0 sm:$0xff] }
  0x2b   :  { %1376 = vmatmul.mubr.f32.vlgmr.msra.gmra.mxu1 %v84_v35  ;;  %352 = vperm.xlu1 %1422, %v274_v36  }
  0x2c   :  { %442 = vperm.xlu0 %1421, %v425_v37   ;;  %1366 = vmatprep.mubr.f32.mxu0 %v77_v38 }
  0x2d   :  { %1378 = vmatprep.mubr.f32.mxu1 %v85_v39 }
  0x2e   :  { %1367 = vmatmul.mubr.f32.gmra.mxu0 %v78_v40  ;;  %v2869_v40 = vmov 0 }
  0x2f   :  { %1379 = vmatmul.mubr.f32.gmra.mxu1 %v86_v41  ;;  %445 = vperm.xlu1 %1422, %v426_v42  }
  0x30   :  { %448 = vperm.xlu0 %1421, %v427_v43   ;;  %1369 = vmatprep.mubr.f32.mxu0 %v79_v44 }
  0x31   :  { %1381 = vmatprep.mubr.f32.mxu1 %v87_v45 }
  0x32   :  { %1370 = vmatmul.mubr.f32.gmra.mxu0 %v80_v46 }
  0x33   :  { %1382 = vmatmul.mubr.f32.gmra.mxu1 %v88_v47  ;;  %451 = vperm.xlu1 %1422, %v428_v48   ;;  %v2871_v48 = vmov 0 }
  0x34   :  { %454 = vperm.xlu0 %1421, %v429_v49   ;;  %1372 = vmatprep.mubr.f32.mxu0 %v81_v50  ;;  %v2873_v49 = vmov 0  ;;  %v512_v50 = vadd.s32 8, %v1689_v57 }
  0x35   :  { %1384 = vmatprep.mubr.f32.mxu1 %v89_v51  ;;  %v520_v51 = vadd.s32 72, %v1689_v57 }
  0x36   :  { %1373 = vmatmul.mubr.f32.gmra.mxu0 %v82_v53  ;;  %vm549_vm4 = vcmp.eq.s32.totalorder %v512_v50, %v1694_v59  ;;  %v519_v53 = vadd.s32 64, %v1689_v57 }
  0x37   :  { %1385 = vmatmul.mubr.f32.gmra.mxu1 %v90_v54  ;;  %457 = vperm.xlu1 %1422, %v430_v55  }
  0x38   :  { %460 = vperm.xlu0 %1421, %v431_v56   ;;  %vm556_vm2 = vcmp.eq.s32.totalorder %v519_v53, %v1694_v59 }
  0x3b   :  { %463 = vperm.xlu1 %1422, %v432_v58  }
  0x3c   :  { %466 = vperm.xlu0 %1421, %v433_v60  }
  0x3f   :  { %469 = vperm.xlu1 %1422, %v434_v62  }
  0x40   :  { %472 = vperm.xlu0 %1421, %v435_v63  }
  0x43   :  { %475 = vperm.xlu1 %1422, %v436_v1  }
  0x44   :  { %478 = vperm.xlu0 %1421, %v437_v2  }
  0x47   :  { %481 = vperm.xlu1 %1422, %v438_v3  }
  0x48   :  { %484 = vperm.xlu0 %1421, %v439_v4  }
  0x4b   :  { %487 = vperm.xlu1 %1422, %v440_v6  }
  0x7e   :  { %v1733_v9 = vpop.permute.xlu0 %277 }
  0x7f   :  { %v361_v2 = vadd.f32 %v1744_v14, %v1733_v9 }
  0x82   :  { %v1735_v10 = vpop.permute.xlu1 %287 }
  0x83   :  { %v283_v11 = vpop.permute.xlu0 %282 }
  0x84   :  { %v362_v56 = vadd.f32 %v1744_v14, %v283_v11 }
  0x87   :  { %v1737_v12 = vpop.permute.xlu1 %292 }
  0x88   :  { %v1739_v13 = vpop.permute.xlu0 %297 }
  0x8c   :  { %v1746_v15 = vpop.permute.xlu1 %302 }
  0x8d   :  { %v308_v16 = vpop.permute.xlu0 %307 }
  0x8e   :  { %v1749_v17 = vadd.f32 %v1744_v14, %v308_v16 }
  0x91   :  { %v1751_v18 = vpop.permute.xlu1 %312 }
  0x92   :  { %v1753_v19 = vpop.permute.xlu0 %317  ;;  %v368_v63 = vadd.f32 %v1744_v14, %v1751_v18 }
  0x93   :  { %v369_v9 = vadd.f32 %v1744_v14, %v1753_v19 }
  0x96   :  { %v323_v20 = vpop.permute.xlu1 %322 }
  0x97   :  { %v1755_v21 = vpop.permute.xlu0 %327  ;;  %v370_v62 = vadd.f32 %v1744_v14, %v323_v20 }
  0x9b   :  { %v1757_v22 = vpop.permute.xlu1 %332 }
  0x9c   :  { %v1759_v23 = vpop.permute.xlu0 %337 }
  0xa0   :  { %v1761_v24 = vpop.permute.xlu1 %342 }
  0xa1   :  { %v348_v25 = vpop.permute.xlu0 %347 }
  0xa2   :  { %v1764_v26 = vadd.f32 %v1744_v14, %v348_v25 }
  0xa6   :  { %v353_v27 = vpop.permute.xlu1 %352 }
  0xa7   :  { %v1767_v28 = vadd.f32 %v1744_v14, %v353_v27  ;;  %v1769_v29 = vpop.permute.xlu0 %442 }
  0xaa   :  { %v1771_v30 = vpop.permute.xlu1 %445 }
  0xab   :  { %v1773_v31 = vpop.permute.xlu0 %448 }
  0xae   :  { %v1775_v32 = vpop.permute.xlu1 %451 }
  0xaf   :  { %v1777_v33 = vpop.permute.xlu0 %454 }
  0xb2   :  { %v1784_v35 = vpop.permute.xlu1 %457 }
  0xb3   :  { %v1786_v36 = vpop.permute.xlu0 %460 }
  0xb4   :  { %vm2848_vm5 = vcmp.eq.s32.totalorder %v1786_v36, %v1782_v34 }
  0xb5   :  { %vm1801_vm9 = vmand %vm2848_vm5, %vm570_vm7  ;;  %vm557_vm7 = vcmp.eq.s32.totalorder %v520_v51, %v1694_v59 }
  0xb6   :  { %v1793_v37 = vpop.permute.xlu1 %463  ;;  %vm1884_vm5 = vmxor %vm557_vm7, %vm2858_vm6 }
  0xb7   :  { %vm2847_vm10 = vcmp.eq.s32.totalorder %v1793_v37, %v1782_v34  ;;  %v1807_v39 = vpop.permute.xlu0 %466 }
  0xb8   :  { %vm1812_vm11 = vmand %vm2847_vm10, %vm571_vm8  ;;  %vm2852_vm10 = vcmp.eq.s32.totalorder %v1807_v39, %v1782_v34 }
  0xb9   :  { %v2870_v40 = vsel %vm1812_vm11, 4294967295, %v2869_v40  ;;  %vm1863_vm8 = vmxor %vm548_vm3, %vm2858_vm6 }
  0xba   :  { %v1816_v41 = vpop.permute.xlu1 %469 }
  0xbb   :  { %v1818_v42 = vpop.permute.xlu0 %472  ;;  %vm2851_vm3 = vcmp.eq.s32.totalorder %v1816_v41, %v1782_v34 }
  0xbe   :  { %v1820_v43 = vpop.permute.xlu1 %475 }
  0xbf   :  { %v1822_v44 = vpop.permute.xlu0 %478 }
  0xc2   :  { %v1824_v45 = vpop.permute.xlu1 %481 }
  0xc3   :  { %v1826_v46 = vpop.permute.xlu0 %484 }
  0xc4   :  { %vm2845_vm13 = vcmp.eq.s32.totalorder %v1826_v46, %v1782_v34 }
  0xc5   :  { %vm1841_vm15 = vmand %vm2845_vm13, %vm578_vm12  ;;  %vm2850_vm12 = vcmp.eq.s32.totalorder %v1769_v29, %v1782_v34 }
  0xc6   :  { %v1833_v47 = vpop.permute.xlu1 %487  ;;  %v2872_v48 = vsel %vm1841_vm15, 4294967295, %v2871_v48  ;;  %vm1873_vm13 = vmxor %vm549_vm4, %vm2858_vm6 }
  0xc7   :  { %vm2846_vm0 = vcmp.eq.s32.totalorder %v1833_v47, %v1782_v34  ;;  %vm1895_vm4 = vmand %vm2850_vm12, %vm1863_vm8  ;;  %vm580_vm12 = vcmp.lt.s32.totalorder %v1694_v59, 8 }
  0xc8   :  { %vm1850_vm1 = vmand %vm2846_vm0, %vm579_vm14  ;;  %vm2849_vm14 = vcmp.eq.s32.totalorder %v1771_v30, %v1782_v34  ;;  %vm552_vm0 = vcmp.eq.s32.totalorder %v515_v52, %v1694_v59 }
  0xc9   :  { %v2874_v49 = vsel %vm1850_vm1, 4294967295, %v2873_v49  ;;  %vm1903_vm7 = vmxor %vm2849_vm14, %vm2858_vm6  ;;  %vm2893_vm1 = vcmp.eq.s32.totalorder %v1769_v29, %v1782_v34 }
  0xca   :  { %vm1913_vm8 = vmxor %vm552_vm0, %vm2858_vm6 }
  0xcb   :  { %vm1921_vm14 = vmxor %vm2851_vm3, %vm2858_vm6 }
  0xcc   :  { %vm1930_vm0 = vmxor %vm2852_vm10, %vm2858_vm6 }
  0xcd   :  { %vm1937_vm3 = vmxor %vm556_vm2, %vm2858_vm6 }
  0xce   :  { %vm632_vm10 = vmand %vm1903_vm7, %vm580_vm12 }
  0xcf   :  { %vm640_vm2 = vmand %vm1921_vm14, %vm580_vm12  ;;  %vm2894_vm14 = vcmp.eq.s32.totalorder %v1771_v30, %v1782_v34 }
  0xd0   :  { %vm615_vm15 = vmxor %vm2893_vm1, %vm2858_vm6 }
  0xd1   :  { %vm639_vm1 = vmand %vm1930_vm0, %vm580_vm12  ;;  %vm2853_vm0 = vcmp.eq.s32.totalorder %v1777_v33, %v1782_v34 }
  0xea   :  { %v1365_v55 = vpop.f32.mrf.mxu0 }
  0xeb   :  { %v378_v60 = vmul.f32 2.0, %v1365_v55  ;;  %v1377_v61 = vpop.f32.mrf.mxu1 }
  0xec   :  { %v386_v0 = vmul.f32 2.0, %v1377_v61  ;;  %v173_v1 = vpop.f32.mrf.mxu0  ;;  %v514_v61 = vadd.s32 24, %v1689_v57 }
  0xed   :  { %v394_v6 = vsub.f32 %v362_v56, %v378_v60  ;;  %v377_v7 = vmul.f32 2.0, %v173_v1  ;;  %v213_v8 = vpop.f32.mrf.mxu1 }
  0xee   :  { %v402_v20 = vsub.f32 %v370_v62, %v386_v0  ;;  %v385_v25 = vmul.f32 2.0, %v213_v8  ;;  %v1368_v27 = vpop.f32.mrf.mxu0  ;;  %vm551_vm7 = vcmp.eq.s32.totalorder %v514_v61, %v1694_v59 }
  0xef   :  { %v410_v50 = vmax.f32 %v394_v6, 0.0  ;;  %v393_v51 = vsub.f32 %v361_v2, %v377_v7  ;;  %v1380_v52 = vpop.f32.mrf.mxu1 }
  0xf0   :  { %v1941_v55 = vmax.f32 %v402_v20, 0.0  ;;  %v401_v56 = vsub.f32 %v369_v9, %v385_v25  ;;  %v1943_v60 = vpop.f32.mrf.mxu0 }
  0xf1   :  { %v1950_v62 = vpop.f32.mrf.mxu1  ;;  %v728_v53 = vsel %vm632_vm10, %v410_v50, inf  ;;  %v1960_v0 = vmax.f32 %v393_v51, 0.0  ;;  %vm582_vm10 = vmand %vm2894_vm14, %vm1873_vm13  ;;  %v792_v20 = vsel %vm580_vm12, %v410_v50, 0.0  ;;  %v364_v51 = vadd.f32 %v1744_v14, %v1737_v12 }
  0xf2   :  { %v1962_v1 = vmax.f32 %v401_v56, 0.0  ;;  %v1964_v2 = vpop.f32.mrf.mxu0  ;;  %v736_v4 = vsel %vm640_vm2, %v1941_v55, inf  ;;  %908 = vmin.xlane.f32.xlu0 %v728_v53  ;;  %vm2895_vm2 = vcmp.eq.s32.totalorder %v1722_v5, %v1694_v59  ;;  %vm631_vm13 = vmand %vm615_vm15, %vm580_vm12  ;;  %v380_v5 = vmul.f32 2.0, %v1368_v27 }
  0xf3   :  { %v1972_v6 = vpop.f32.mrf.mxu1  ;;  %924 = vmin.xlane.f32.xlu1 %v736_v4  ;;  %vm1983_vm11 = vmxor %vm2895_vm2, %vm2858_vm6  ;;  %v727_v16 = vsel %vm631_vm13, %v1960_v0, inf  ;;  %vm2900_vm15 = vcmp.eq.s32.totalorder %v1816_v41, %v1782_v34  ;;  %v2016_v56 = vadd.f32 %v1744_v14, %v1739_v13  ;;  %vm2854_vm2 = vcmp.eq.s32.totalorder %v1775_v32, %v1782_v34 }
  0xf4   :  { %v193_v29 = vpop.f32.mrf.mxu0  ;;  %v735_v7 = vsel %vm639_vm1, %v1962_v1, inf  ;;  %vm1992_vm14 = vmand %vm582_vm10, %vm580_vm12  ;;  %v396_v61 = vsub.f32 %v364_v51, %v380_v5  ;;  %v388_v4 = vmul.f32 2.0, %v1380_v52  ;;  %v800_v8 = vsel %vm580_vm12, %v1941_v55, 0.0 }
  0xf5   :  { %v233_v30 = vpop.f32.mrf.mxu1  ;;  %vm2006_vm10 = vmand %vm2900_vm15, %vm1884_vm5  ;;  %v664_v27 = vsel %vm1992_vm14, %v410_v50, 0.0  ;;  %v372_v50 = vadd.f32 %v1744_v14, %v1757_v22  ;;  %v808_v22 = vmax.f32 %v792_v20, 0.0  ;;  %vm2911_vm13 = vcmp.eq.s32.totalorder %v1807_v39, %v1782_v34 }
  0xf6   :  { %v1374_v9 = vpop.f32.mrf.mxu0  ;;  %922 = vmin.xlane.f32.xlu0 %v735_v7  ;;  %vm2024_vm5 = vmand %vm1895_vm4, %vm580_vm12  ;;  %v680_v53 = vmax.f32 %v664_v27, 0.0  ;;  %v381_v5 = vmul.f32 2.0, %v193_v29  ;;  %v389_v39 = vmul.f32 2.0, %v233_v30  ;;  %v816_v30 = vmax.f32 %v800_v8, 0.0 }
  0xf7   :  { %v1386_v19 = vpop.f32.mrf.mxu1  ;;  %906 = vmin.xlane.f32.xlu1 %v727_v16  ;;  %vm2033_vm1 = vmxor %vm551_vm7, %vm2858_vm6  ;;  %v384_v18 = vmul.f32 2.0, %v1374_v9  ;;  %v373_v9 = vadd.f32 %v1744_v14, %v1759_v23  ;;  %v663_v27 = vsel %vm2024_vm5, %v1960_v0, 0.0  ;;  %v2122_v51 = vmax.f32 %v396_v61, 0.0 }
  0xf8   :  { %vm2044_vm4 = vmand %vm2853_vm0, %vm1913_vm8  ;;  %v392_v11 = vmul.f32 2.0, %v1386_v19  ;;  %v203_v7 = vpop.f32.mrf.mxu0  ;;  %vm2857_vm8 = vcmp.eq.s32.totalorder %v1773_v31, %v1782_v34  ;;  %vm2919_vm0 = vcmp.eq.s32.totalorder %v1793_v37, %v1782_v34  ;;  %v679_v3 = vmax.f32 %v663_v27, 0.0 }
  0xf9   :  { %vm2052_vm7 = vmand %vm2006_vm10, %vm580_vm12  ;;  %v243_v16 = vpop.f32.mrf.mxu1  ;;  %vm2856_vm10 = vcmp.eq.s32.totalorder %v1822_v44, %v1782_v34  ;;  %v400_v25 = vsub.f32 %v368_v63, %v384_v18  ;;  %v383_v19 = vmul.f32 2.0, %v203_v7  ;;  %v404_v63 = vsub.f32 %v372_v50, %v388_v4 }
  0xfa   :  { %860 = vmax.xlane.f32.xlu0 %v680_v53  ;;  %vm2068_vm14 = vmand %vm2911_vm13, %vm1937_vm3  ;;  %v672_v20 = vsel %vm2052_vm7, %v1941_v55, 0.0  ;;  %vm2855_vm3 = vcmp.eq.s32.totalorder %v1820_v43, %v1782_v34  ;;  %vm2916_vm7 = vcmp.eq.s32.totalorder %v1786_v36, %v1782_v34  ;;  %v408_v41 = vsub.f32 %v1767_v28, %v392_v11 }
  0xfb   :  { %956 = vmax.xlane.f32.xlu1 %v808_v22  ;;  %vm2079_vm15 = vmxor %vm2854_vm2, %vm2858_vm6  ;;  %v688_v54 = vmax.f32 %v672_v20, 0.0  ;;  %v391_v53 = vmul.f32 2.0, %v243_v16  ;;  %v397_v18 = vsub.f32 %v2016_v56, %v381_v5  ;;  %v513_v22 = vadd.s32 16, %v1689_v57 }
  0xfc   :  { %vm2091_vm13 = vmxor %vm2916_vm7, %vm2858_vm6  ;;  %v405_v50 = vsub.f32 %v373_v9, %v389_v39  ;;  %v2930_v56 = vmov 0  ;;  %v379_v61 = vmul.f32 2.0, %v1943_v60  ;;  %v2161_v4 = vmax.f32 %v400_v25, 0.0 }
  0xfd   :  { %vm2099_vm2 = vmxor %vm2919_vm0, %vm2858_vm6  ;;  %v399_v11 = vsub.f32 %v1749_v17, %v383_v19  ;;  %v791_v7 = vsel %vm580_vm12, %v1960_v0, 0.0  ;;  %v2187_v60 = vmax.f32 %v404_v63, 0.0  ;;  %v2189_v8 = vmax.f32 %v408_v41, 0.0 }
  0xfe   :  { %vm2110_vm7 = vmand %vm2044_vm4, %vm580_vm12  ;;  %876 = vmax.xlane.f32.xlu0 %v688_v54  ;;  %v407_v0 = vsub.f32 %v1764_v26, %v391_v53  ;;  %v363_v9 = vadd.f32 %v1744_v14, %v1735_v10  ;;  %v2195_v52 = vmax.f32 %v397_v18, 0.0  ;;  %v387_v26 = vmul.f32 2.0, %v1950_v62 }
  0xff   :  { %vm2118_vm0 = vmand %vm2068_vm14, %vm580_vm12  ;;  %972 = vmax.xlane.f32.xlu1 %v816_v30  ;;  %v2216_v5 = vmax.f32 %v405_v50, 0.0  ;;  %v807_v16 = vmax.f32 %v791_v7, 0.0  ;;  %v2226_v23 = vmax.f32 %v399_v11, 0.0  ;;  %v522_v27 = vadd.s32 88, %v1689_v57 }
 0x100   :  { %vm2129_vm5 = vmxor %vm2855_vm3, %vm2858_vm6  ;;  %v395_v12 = vsub.f32 %v363_v9, %v379_v61  ;;  %v2250_v29 = vmax.f32 %v407_v0, 0.0  ;;  %v671_v19 = vsel %vm2118_vm0, %v1962_v1, 0.0  ;;  %v794_v61 = vsel %vm580_vm12, %v2122_v51, 0.0 }
 0x101   :  { %vm2140_vm4 = vmand %vm2856_vm10, %vm1983_vm11  ;;  %v366_v17 = vadd.f32 %v1744_v14, %v1746_v15  ;;  %v810_v9 = vmax.f32 %v794_v61, 0.0  ;;  %v798_v36 = vsel %vm580_vm12, %v2161_v4, 0.0 }
 0x102   :  { %vm2148_vm14 = vmxor %vm2857_vm8, %vm2858_vm6  ;;  %vm2937_vm8 = vcmp.eq.s32.totalorder %v1833_v47, %v1782_v34  ;;  %858 = vmax.xlane.f32.xlu0 %v679_v3  ;;  %v2295_v13 = vmax.f32 %v395_v12, 0.0  ;;  %v382_v3 = vmul.f32 2.0, %v1964_v2 }
 0x103   :  { %v2931_v56 = vsel %vm2148_vm14, 4294967295, %v2930_v56  ;;  %vm2156_vm3 = vmand %vm1801_vm9, %vm580_vm12  ;;  %vm2934_vm9 = vnez %v2870_v40 }
 0x104   :  { %vm634_vm11 = vmand %vm2079_vm15, %vm580_vm12  ;;  %vm550_vm15 = vcmp.eq.s32.totalorder %v513_v22, %v1694_v59  ;;  %v687_v22 = vmax.f32 %v671_v19, 0.0  ;;  %v669_v7 = vsel %vm2156_vm3, %v2226_v23, 0.0  ;;  %v398_v47 = vsub.f32 %v366_v17, %v382_v3 }
 0x105   :  { %vm2175_vm10 = vmand %vm2934_vm9, %vm580_vm12  ;;  %v730_v40 = vsel %vm634_vm11, %v2122_v51, inf  ;;  %vm2942_vm11 = vcmp.eq.s32.totalorder %v1775_v32, %v1782_v34  ;;  %v799_v32 = vsel %vm580_vm12, %v1962_v1, 0.0  ;;  %v667_v1 = vsel %vm2110_vm7, %v2195_v52, 0.0 }
 0x106   :  { %vm2183_vm14 = vmxor %vm2937_vm8, %vm2858_vm6  ;;  %912 = vmin.xlane.f32.xlu1 %v730_v40  ;;  %954 = vmax.xlane.f32.xlu0 %v807_v16  ;;  %v815_v37 = vmax.f32 %v799_v32, 0.0  ;;  %v670_v2 = vsel %vm2175_vm10, %v2161_v4, 0.0  ;;  %v802_v16 = vsel %vm580_vm12, %v2187_v60, 0.0  ;;  %v521_v32 = vadd.s32 80, %v1689_v57 }
 0x107   :  { %vm2201_vm8 = vmand %vm2129_vm5, %vm580_vm12  ;;  %v818_v10 = vmax.f32 %v802_v16, 0.0  ;;  %v683_v20 = vmax.f32 %v667_v1, 0.0  ;;  %v685_v1 = vmax.f32 %v669_v7, 0.0 }
 0x108   :  { %vm2211_vm9 = vmand %vm2942_vm11, %vm2033_vm1  ;;  %v738_v25 = vsel %vm2201_vm8, %v2187_v60, inf }
 0x109   :  { %vm2222_vm5 = vmand %vm2099_vm2, %vm580_vm12  ;;  %vm2949_vm2 = vcmp.eq.s32.totalorder %v1826_v46, %v1782_v34  ;;  %v371_v46 = vadd.f32 %v1744_v14, %v1755_v21 }
 0x10a   :  { %v734_v62 = vsel %vm2222_vm5, %v2161_v4, inf  ;;  %vm2238_vm1 = vmand %vm2183_vm14, %vm580_vm12  ;;  %928 = vmin.xlane.f32.xlu1 %v738_v25  ;;  %970 = vmax.xlane.f32.xlu0 %v815_v37  ;;  %v805_v4 = vsel %vm580_vm12, %v2250_v29, 0.0 }
 0x10b   :  { %vm2246_vm11 = vmxor %vm2949_vm2, %vm2858_vm6  ;;  %v742_v30 = vsel %vm2238_vm1, %v2189_v8, inf  ;;  %v403_v18 = vsub.f32 %v371_v46, %v387_v26  ;;  %v390_v26 = vmul.f32 2.0, %v1972_v6  ;;  %v374_v6 = vadd.f32 %v1744_v14, %v1761_v24 }
 0x10c   :  { %vm2268_vm14 = vmand %vm2140_vm4, %vm580_vm12  ;;  %v414_v14 = vmax.f32 %v398_v47, 0.0  ;;  %v821_v58 = vmax.f32 %v805_v4, 0.0 }
 0x10d   :  { %vm2278_vm0 = vmxor %vm550_vm15, %vm2858_vm6  ;;  %v675_v41 = vsel %vm2268_vm14, %v2216_v5, 0.0  ;;  %vm2966_vm6 = vnez %v2931_v56  ;;  %v419_v40 = vmax.f32 %v403_v18, 0.0  ;;  %v406_v24 = vsub.f32 %v374_v6, %v390_v26 }
 0x10e   :  { %vm2291_vm4 = vmand %vm2091_vm13, %vm580_vm12  ;;  %vm2960_vm13 = vnez %v2872_v48  ;;  %874 = vmax.xlane.f32.xlu1 %v687_v22  ;;  %v796_v0 = vsel %vm580_vm12, %v414_v14, 0.0  ;;  %v691_v39 = vmax.f32 %v675_v41, 0.0  ;;  %v797_v41 = vsel %vm580_vm12, %v2226_v23, 0.0 }
 0x10f   :  { %v733_v28 = vsel %vm2291_vm4, %v2226_v23, inf  ;;  %vm2304_vm15 = vmand %vm2246_vm11, %vm580_vm12  ;;  %vm559_vm11 = vcmp.eq.s32.totalorder %v522_v27, %v1694_v59  ;;  %v516_v27 = vadd.s32 40, %v1689_v57  ;;  %v801_v3 = vsel %vm580_vm12, %v419_v40, 0.0 }
 0x110   :  { %vm2312_vm2 = vmand %vm2960_vm13, %vm580_vm12  ;;  %v741_v11 = vsel %vm2304_vm15, %v2250_v29, inf  ;;  %vm2963_vm13 = vnez %v2874_v49  ;;  %vm2968_vm15 = vcmp.eq.s32.totalorder %v1818_v42, %v1782_v34  ;;  %v817_v17 = vmax.f32 %v801_v3, 0.0 }
 0x111   :  { %vm2331_vm8 = vmand %vm2963_vm13, %vm580_vm12  ;;  %v677_v49 = vsel %vm2312_vm2, %v2250_v29, 0.0  ;;  %vm2967_vm13 = vmmov 1   ;;  %v813_v53 = vmax.f32 %v797_v41, 0.0 }
 0x112   :  { %vm633_vm3 = vmand %vm2966_vm6, %vm580_vm12  ;;  %v678_v56 = vsel %vm2331_vm8, %v2189_v8, 0.0  ;;  %960 = vmax.xlane.f32.xlu1 %v810_v9  ;;  %v693_v38 = vmax.f32 %v677_v49, 0.0 }
 0x113   :  { %vm2351_vm4 = vmxor %vm2968_vm15, %vm2967_vm13  ;;  %v729_v15 = vsel %vm633_vm3, %v2295_v13, inf  ;;  %vm2865_vm15 = vcmp.eq.s32.totalorder %v1784_v35, %v1782_v34  ;;  %v694_v23 = vmax.f32 %v678_v56, 0.0 }
 0x114   :  { %vm575_vm6 = vmxor %vm559_vm11, %vm2967_vm13  ;;  %910 = vmin.xlane.f32.xlu0 %v729_v15 }
 0x115   :  { %vm2368_vm3 = vmand %vm2211_vm9, %vm580_vm12  ;;  %vm2973_vm9 = vcmp.eq.s32.totalorder %v1820_v43, %v1782_v34 }
 0x116   :  { %vm641_vm11 = vmand %vm2351_vm4, %vm580_vm12  ;;  %v666_v25 = vsel %vm2368_vm3, %v2122_v51, 0.0  ;;  %vm2974_vm4 = vcmp.eq.s32.totalorder %v1773_v31, %v1782_v34  ;;  %976 = vmax.xlane.f32.xlu1 %v818_v10  ;;  %vm558_vm3 = vcmp.eq.s32.totalorder %v521_v32, %v1694_v59  ;;  %v422_v31 = vmax.f32 %v406_v24, 0.0 }
 0x117   :  { %vm592_vm8 = vmand %vm2973_vm9, %vm575_vm6  ;;  %v737_v54 = vsel %vm641_vm11, %v419_v40, inf  ;;  %vm2866_vm11 = vcmp.eq.s32.totalorder %v1824_v45, %v1782_v34  ;;  %v682_v43 = vmax.f32 %v666_v25, 0.0 }
 0x118   :  { %vm620_vm2 = vmxor %vm2865_vm15, %vm2967_vm13  ;;  %926 = vmin.xlane.f32.xlu0 %v737_v54 }
 0x119   :  { %vm583_vm6 = vmand %vm2974_vm4, %vm2278_vm0 }
 0x11a   :  { %vm610_vm9 = vmand %vm592_vm8, %vm580_vm12 }
 0x11b   :  { %vm636_vm15 = vmand %vm620_vm2, %vm580_vm12  ;;  %v674_v51 = vsel %vm610_vm9, %v2187_v60, 0.0  ;;  %v793_v60 = vsel %vm580_vm12, %v2295_v13, 0.0 }
 0x11c   :  { %vm628_vm0 = vmxor %vm2866_vm11, %vm2967_vm13  ;;  %v732_v19 = vsel %vm636_vm15, %v414_v14, inf  ;;  %864 = vmax.xlane.f32.xlu0 %v682_v43  ;;  %v690_v46 = vmax.f32 %v674_v51, 0.0  ;;  %vm2975_vm15 = vcmp.eq.s32.totalorder %v1818_v42, %v1782_v34  ;;  %v809_v18 = vmax.f32 %v793_v60, 0.0 }
 0x11d   :  { %vm574_vm4 = vmxor %vm558_vm3, %vm2967_vm13  ;;  %916 = vmin.xlane.f32.xlu1 %v732_v19  ;;  %v524_v42 = vadd.s32 104, %v1689_v57 }
 0x11e   :  { %vm601_vm8 = vmand %vm583_vm6, %vm580_vm12  ;;  %vm553_vm6 = vcmp.eq.s32.totalorder %v516_v27, %v1694_v59 }
 0x11f   :  { %vm644_vm2 = vmand %vm628_vm0, %vm580_vm12  ;;  %v665_v37 = vsel %vm601_vm8, %v2295_v13, 0.0 }
 0x120   :  { %vm591_vm9 = vmand %vm2975_vm15, %vm574_vm4  ;;  %v740_v21 = vsel %vm644_vm2, %v422_v31, inf  ;;  %880 = vmax.xlane.f32.xlu0 %v690_v46  ;;  %v681_v22 = vmax.f32 %v665_v37, 0.0  ;;  %vm2976_vm4 = vcmp.eq.s32.totalorder %v1777_v33, %v1782_v34  ;;  %vm2977_vm2 = vcmp.eq.s32.totalorder %v1784_v35, %v1782_v34 }
 0x121   :  { %932 = vmin.xlane.f32.xlu1 %v740_v21  ;;  %vm609_vm3 = vmand %vm591_vm9, %vm580_vm12  ;;  %vm561_vm9 = vcmp.eq.s32.totalorder %v524_v42, %v1694_v59  ;;  %v812_v33 = vmax.f32 %v796_v0, 0.0  ;;  %v804_v35 = vsel %vm580_vm12, %v422_v31, 0.0 }
 0x122   :  { %v673_v61 = vsel %vm609_vm3, %v419_v40, 0.0  ;;  %vm569_vm0 = vmxor %vm553_vm6, %vm2967_vm13  ;;  %vm2978_vm3 = vcmp.eq.s32.totalorder %v1822_v44, %v1782_v34  ;;  %v820_v44 = vmax.f32 %v804_v35, 0.0 }
 0x123   :  { %vm619_vm8 = vmxor %vm2976_vm4, %vm2967_vm13  ;;  %v689_v13 = vmax.f32 %v673_v61, 0.0 }
 0x124   :  { %958 = vmax.xlane.f32.xlu0 %v809_v18  ;;  %vm586_vm15 = vmand %vm2977_vm2, %vm569_vm0  ;;  %vm2979_vm2 = vcmp.eq.s32.totalorder %v1824_v45, %v1782_v34  ;;  %v795_v34 = vsel %vm580_vm12, %v2195_v52, 0.0 }
 0x125   :  { %862 = vmax.xlane.f32.xlu1 %v681_v22  ;;  %vm635_vm6 = vmand %vm619_vm8, %vm580_vm12  ;;  %v811_v45 = vmax.f32 %v795_v34, 0.0 }
 0x126   :  { %vm627_vm4 = vmxor %vm2978_vm3, %vm2967_vm13  ;;  %v731_v57 = vsel %vm635_vm6, %v2195_v52, inf  ;;  %v814_v52 = vmax.f32 %v798_v36, 0.0 }
 0x127   :  { %vm577_vm11 = vmxor %vm561_vm9, %vm2967_vm13 }
 0x128   :  { %974 = vmax.xlane.f32.xlu0 %v817_v17  ;;  %vm604_vm0 = vmand %vm586_vm15, %vm580_vm12 }
 0x129   :  { %878 = vmax.xlane.f32.xlu1 %v689_v13  ;;  %vm643_vm8 = vmand %vm627_vm4, %vm580_vm12  ;;  %v668_v15 = vsel %vm604_vm0, %v414_v14, 0.0 }
 0x12a   :  { %vm594_vm3 = vmand %vm2979_vm2, %vm577_vm11  ;;  %v739_v40 = vsel %vm643_vm8, %v2216_v5, inf  ;;  %v684_v9 = vmax.f32 %v668_v15, 0.0  ;;  %vm1274_vm2 = vcmask 7168  }
 0x12b   :  { %vm612_vm13 = vmand %vm594_vm3, %vm580_vm12 }
 0x12c   :  { %914 = vmin.xlane.f32.xlu0 %v731_v57  ;;  %v676_v47 = vsel %vm612_vm13, %v422_v31, 0.0 }
 0x12d   :  { %964 = vmax.xlane.f32.xlu1 %v812_v33  ;;  %v692_v26 = vmax.f32 %v676_v47, 0.0 }
 0x130   :  { %930 = vmin.xlane.f32.xlu0 %v739_v40 }
 0x131   :  { %980 = vmax.xlane.f32.xlu1 %v820_v44 }
 0x134   :  { %868 = vmax.xlane.f32.xlu0 %v684_v9 }
 0x135   :  { %920 = vmin.xlane.f32.xlu1 %v734_v62  ;;  %v803_v62 = vsel %vm580_vm12, %v2216_v5, 0.0  ;;  %v686_v5 = vmax.f32 %v670_v2, 0.0 }
 0x136   :  { %v819_v16 = vmax.f32 %v803_v62, 0.0 }
 0x138   :  { %884 = vmax.xlane.f32.xlu0 %v692_v26 }
 0x139   :  { %936 = vmin.xlane.f32.xlu1 %v742_v30  ;;  %v806_v30 = vsel %vm580_vm12, %v2189_v8, 0.0 }
 0x13a   :  { %v822_v63 = vmax.f32 %v806_v30, 0.0 }
 0x13c   :  { %962 = vmax.xlane.f32.xlu0 %v811_v45 }
 0x13d   :  { %866 = vmax.xlane.f32.xlu1 %v683_v20 }
 0x140   :  { %978 = vmax.xlane.f32.xlu0 %v819_v16 }
 0x141   :  { %882 = vmax.xlane.f32.xlu1 %v691_v39 }
 0x144   :  { %918 = vmin.xlane.f32.xlu0 %v733_v28 }
 0x145   :  { %968 = vmax.xlane.f32.xlu1 %v814_v52 }
 0x148   :  { %934 = vmin.xlane.f32.xlu0 %v741_v11 }
 0x149   :  { %984 = vmax.xlane.f32.xlu1 %v822_v63 }
 0x14c   :  { %872 = vmax.xlane.f32.xlu0 %v686_v5 }
 0x14d   :  { %870 = vmax.xlane.f32.xlu1 %v685_v1 }
 0x150   :  { %966 = vmax.xlane.f32.xlu0 %v813_v53 }
 0x151   :  { %886 = vmax.xlane.f32.xlu1 %v693_v38 }
 0x154   :  { %982 = vmax.xlane.f32.xlu0 %v821_v58 }
 0x158   :  { %888 = vmax.xlane.f32.xlu0 %v694_v23 }
 0x17b   :  { %v909_v28 = vpop.xlane.xlu0 %908 }
 0x17c   :  { %v925_v50 = vpop.xlane.xlu1 %924 }
 0x17f   :  { %v923_v55 = vpop.xlane.xlu0 %922 }
 0x180   :  { %v907_v11 = vpop.xlane.xlu1 %906 }
 0x183   :  { %v861_v7 = vpop.xlane.xlu0 %860 }
 0x184   :  { %v957_v2 = vpop.xlane.xlu1 %956  ;;  %1423 = vrsqrt.f32 %v861_v7  ;;  %vm995_vm12 = vcmp.eq.f32.partialorder %v861_v7, inf  ;;  %v998_v46 = vand.u32 2147483648, %v861_v7  ;;  %vm997_vm9 = vcmp.eq.f32.partialorder %v861_v7, 0.0 }
 0x185   :  { %v1099_v49 = vmin.f32 %v909_v28, %v957_v2 }
 0x187   :  { %1425 = vrsqrt.f32 %v1099_v49  ;;  %v877_v59 = vpop.xlane.xlu0 %876  ;;  %vm1123_vm11 = vcmp.eq.f32.partialorder %v1099_v49, inf  ;;  %v1126_v27 = vand.u32 2147483648, %v1099_v49  ;;  %vm1125_vm15 = vcmp.eq.f32.partialorder %v1099_v49, 0.0 }
 0x188   :  { %v973_v29 = vpop.xlane.xlu1 %972  ;;  %1427 = vrsqrt.f32 %v877_v59  ;;  %vm1051_vm6 = vcmp.eq.f32.partialorder %v877_v59, inf  ;;  %vm1053_vm0 = vcmp.eq.f32.partialorder %v877_v59, 0.0  ;;  %v1054_v35 = vand.u32 2147483648, %v877_v59 }
 0x189   :  { %v1107_v12 = vmin.f32 %v925_v50, %v973_v29 }
 0x18b   :  { %1429 = vrsqrt.f32 %v1107_v12  ;;  %v2516_v6 = vpop.xlane.xlu0 %858  ;;  %vm1179_vm4 = vcmp.eq.f32.partialorder %v1107_v12, inf  ;;  %v1182_v33 = vand.u32 2147483648, %v1107_v12  ;;  %vm1181_vm8 = vcmp.eq.f32.partialorder %v1107_v12, 0.0 }
 0x18c   :  { %1431 = vrsqrt.f32 %v2516_v6  ;;  %vm988_vm3 = vcmp.eq.f32.partialorder %v2516_v6, inf  ;;  %v991_v1 = vand.u32 2147483648, %v2516_v6  ;;  %vm990_vm7 = vcmp.eq.f32.partialorder %v2516_v6, 0.0 }
 0x18f   :  { %v913_v48 = vpop.xlane.xlu1 %912  ;;  %v955_v8 = vpop.xlane.xlu0 %954 }
 0x190   :  { %v2519_v32 = vmin.f32 %v907_v11, %v955_v8 }
 0x191   :  { %v1424_v10 = vpop.eup %1423 }
 0x192   :  { %v994_v54 = vmul.f32 %v1424_v10, %v861_v7  ;;  %1433 = vrsqrt.f32 %v2519_v32  ;;  %vm1116_vm13 = vcmp.eq.f32.partialorder %v2519_v32, inf  ;;  %v1119_v41 = vand.u32 2147483648, %v2519_v32 }
 0x193   :  { %v929_v56 = vpop.xlane.xlu1 %928  ;;  %v971_v25 = vpop.xlane.xlu0 %970  ;;  %vm1118_vm5 = vcmp.eq.f32.partialorder %v2519_v32, 0.0 }
 0x194   :  { %v1426_v14 = vpop.eup %1425  ;;  %v2524_v43 = vmin.f32 %v923_v55, %v971_v25  ;;  %v996_v19 = vsel %vm995_vm12, %v861_v7, %v994_v54 }
 0x195   :  { %v1428_v51 = vpop.eup %1427  ;;  %v1122_v31 = vmul.f32 %v1426_v14, %v1099_v49  ;;  %v999_v3 = vsel %vm997_vm9, %v998_v46, %v996_v19 }
 0x196   :  { %v1050_v60 = vmul.f32 %v1428_v51, %v877_v59  ;;  %vm1172_vm14 = vcmp.eq.f32.partialorder %v2524_v43, inf  ;;  %vm1174_vm12 = vcmp.eq.f32.partialorder %v2524_v43, 0.0 }
 0x197   :  { %v2522_v24 = vpop.xlane.xlu1 %874  ;;  %v1124_v21 = vsel %vm1123_vm11, %v1099_v49, %v1122_v31 }
 0x198   :  { %1435 = vrsqrt.f32 %v2522_v24  ;;  %v1430_v18 = vpop.eup %1429  ;;  %v1127_v22 = vsel %vm1125_vm15, %v1126_v27, %v1124_v21  ;;  %v1052_v0 = vsel %vm1051_vm6, %v877_v59, %v1050_v60  ;;  %vm1044_vm1 = vcmp.eq.f32.partialorder %v2522_v24, inf }
 0x199   :  { %1437 = vrsqrt.f32 %v2524_v43  ;;  %v1432_v42 = vpop.eup %1431  ;;  %v1227_v17 = vsub.f32 %v999_v3, %v1127_v22  ;;  %v1178_v13 = vmul.f32 %v1430_v18, %v1107_v12  ;;  %v1055_v47 = vsel %vm1053_vm0, %v1054_v35, %v1052_v0 }
 0x19a   :  { %v987_v26 = vmul.f32 %v1432_v42, %v2516_v6  ;;  %v1047_v49 = vand.u32 2147483648, %v2522_v24  ;;  %v1175_v59 = vand.u32 2147483648, %v2524_v43  ;;  %vm1046_vm10 = vcmp.eq.f32.partialorder %v2522_v24, 0.0 }
 0x19b   :  { %v961_v61 = vpop.xlane.xlu1 %960  ;;  %v1243_v44 = vadd.f32 1.0, %v1227_v17  ;;  %v1180_v40 = vsel %vm1179_vm4, %v1107_v12, %v1178_v13 }
 0x19c   :  { %v2530_v57 = vmin.f32 %v913_v48, %v961_v61  ;;  %v1183_v9 = vsel %vm1181_vm8, %v1182_v33, %v1180_v40  ;;  %v989_v52 = vsel %vm988_vm3, %v2516_v6, %v987_v26 }
 0x19d   :  { %v2528_v37 = vpop.xlane.xlu0 %910  ;;  %v1259_v45 = vmax.f32 %v1243_v44, 0.0  ;;  %v1235_v20 = vsub.f32 %v1055_v47, %v1183_v9  ;;  %v992_v58 = vsel %vm990_vm7, %v991_v1, %v989_v52 }
 0x19e   :  { %1439 = vrsqrt.f32 %v2530_v57  ;;  %vm1137_vm11 = vcmp.eq.f32.partialorder %v2530_v57, inf  ;;  %v1140_v18 = vand.u32 2147483648, %v2530_v57  ;;  %vm1139_vm9 = vcmp.eq.f32.partialorder %v2530_v57, 0.0 }
 0x19f   :  { %v977_v34 = vpop.xlane.xlu1 %976  ;;  %v1434_v16 = vpop.eup %1433  ;;  %1276 = vst.msk [vmem:[%s2844_s6 + $0x8] sm:$0xff] %vm1274_vm2, %v1259_v45  ;;  %v1251_v39 = vadd.f32 1.0, %v1235_v20 }
 0x1a0   :  { %v2536_v62 = vmin.f32 %v929_v56, %v977_v34  ;;  %v1115_v30 = vmul.f32 %v1434_v16, %v2519_v32 }
 0x1a1   :  { %v2533_v15 = vpop.xlane.xlu0 %926  ;;  %v1267_v5 = vmax.f32 %v1251_v39, 0.0 }
 0x1a2   :  { %1441 = vrsqrt.f32 %v2536_v62  ;;  %v1117_v38 = vsel %vm1116_vm13, %v2519_v32, %v1115_v30  ;;  %vm1193_vm4 = vcmp.eq.f32.partialorder %v2536_v62, inf  ;;  %vm1195_vm8 = vcmp.eq.f32.partialorder %v2536_v62, 0.0 }
 0x1a3   :  { %1284 = vst.msk [vmem:[%s2844_s6 + $0x48] sm:$0xff] %vm1274_vm2, %v1267_v5  ;;  %v1120_v23 = vsel %vm1118_vm5, %v1119_v41, %v1117_v38 }
 0x1a4   :  { %v1226_v55 = vsub.f32 %v992_v58, %v1120_v23 }
 0x1a5   :  { %v2544_v36 = vpop.xlane.xlu0 %864  ;;  %v1436_v53 = vpop.eup %1435 }
 0x1a6   :  { %v2548_v63 = vpop.xlane.xlu1 %916  ;;  %1443 = vrsqrt.f32 %v2544_v36  ;;  %v1438_v4 = vpop.eup %1437  ;;  %v1043_v28 = vmul.f32 %v1436_v53, %v2522_v24  ;;  %v1242_v29 = vadd.f32 1.0, %v1226_v55  ;;  %vm1009_vm15 = vcmp.eq.f32.partialorder %v2544_v36, inf }
 0x1a7   :  { %v1171_v11 = vmul.f32 %v1438_v4, %v2524_v43  ;;  %v1012_v22 = vand.u32 2147483648, %v2544_v36  ;;  %vm1011_vm6 = vcmp.eq.f32.partialorder %v2544_v36, 0.0 }
 0x1a8   :  { %v1045_v2 = vsel %vm1044_vm1, %v2522_v24, %v1043_v28  ;;  %v1258_v32 = vmax.f32 %v1242_v29, 0.0 }
 0x1a9   :  { %v2562_v50 = vpop.xlane.xlu0 %880  ;;  %v1173_v12 = vsel %vm1172_vm14, %v2524_v43, %v1171_v11  ;;  %v1048_v6 = vsel %vm1046_vm10, %v1047_v49, %v1045_v2 }
 0x1aa   :  { %v2566_v7 = vpop.xlane.xlu1 %932  ;;  %1445 = vrsqrt.f32 %v2562_v50  ;;  %v1176_v48 = vsel %vm1174_vm12, %v1175_v59, %v1173_v12  ;;  %1275 = vst.msk [vmem:[%s2844_s6] sm:$0xff] %vm1274_vm2, %v1258_v32  ;;  %vm1065_vm0 = vcmp.eq.f32.partialorder %v2562_v50, inf  ;;  %vm1067_vm3 = vcmp.eq.f32.partialorder %v2562_v50, 0.0 }
 0x1ab   :  { %v1440_v56 = vpop.eup %1439  ;;  %v1234_v10 = vsub.f32 %v1048_v6, %v1176_v48 }
 0x1ac   :  { %v1136_v24 = vmul.f32 %v1440_v56, %v2530_v57 }
 0x1ad   :  { %v959_v8 = vpop.xlane.xlu0 %958  ;;  %v1250_v14 = vadd.f32 1.0, %v1234_v10 }
 0x1ae   :  { %v2576_v54 = vpop.xlane.xlu1 %862  ;;  %v2579_v25 = vmin.f32 %v2528_v37, %v959_v8  ;;  %v1138_v21 = vsel %vm1137_vm11, %v2530_v57, %v1136_v24  ;;  %v1196_v57 = vand.u32 2147483648, %v2536_v62 }
 0x1af   :  { %1447 = vrsqrt.f32 %v2576_v54  ;;  %v1442_v51 = vpop.eup %1441  ;;  %v1266_v31 = vmax.f32 %v1250_v14, 0.0  ;;  %v1141_v13 = vsel %vm1139_vm9, %v1140_v18, %v1138_v21  ;;  %vm1002_vm13 = vcmp.eq.f32.partialorder %v2576_v54, inf }
 0x1b0   :  { %1449 = vrsqrt.f32 %v2579_v25  ;;  %v1192_v60 = vmul.f32 %v1442_v51, %v2536_v62  ;;  %v1005_v38 = vand.u32 2147483648, %v2576_v54  ;;  %vm1130_vm7 = vcmp.eq.f32.partialorder %v2579_v25, inf }
 0x1b1   :  { %v975_v43 = vpop.xlane.xlu0 %974  ;;  %1283 = vst.msk [vmem:[%s2844_s6 + $0x40] sm:$0xff] %vm1274_vm2, %v1266_v31  ;;  %v1133_v4 = vand.u32 2147483648, %v2579_v25  ;;  %vm1004_vm5 = vcmp.eq.f32.partialorder %v2576_v54, 0.0  ;;  %vm1132_vm1 = vcmp.eq.f32.partialorder %v2579_v25, 0.0 }
 0x1b2   :  { %v2588_v19 = vpop.xlane.xlu1 %878  ;;  %v2591_v46 = vmin.f32 %v2533_v15, %v975_v43  ;;  %v1194_v44 = vsel %vm1193_vm4, %v2536_v62, %v1192_v60  ;;  %v1068_v15 = vand.u32 2147483648, %v2562_v50 }
 0x1b3   :  { %v1444_v27 = vpop.eup %1443  ;;  %1451 = vrsqrt.f32 %v2588_v19  ;;  %v1197_v45 = vsel %vm1195_vm8, %v1196_v57, %v1194_v44  ;;  %vm1058_vm14 = vcmp.eq.f32.partialorder %v2588_v19, inf  ;;  %v1061_v6 = vand.u32 2147483648, %v2588_v19 }
 0x1b4   :  { %v1008_v37 = vmul.f32 %v1444_v27, %v2544_v36  ;;  %1453 = vrsqrt.f32 %v2591_v46  ;;  %vm1186_vm10 = vcmp.eq.f32.partialorder %v2591_v46, inf  ;;  %v1189_v48 = vand.u32 2147483648, %v2591_v46 }
 0x1b5   :  { %v2606_v3 = vpop.xlane.xlu0 %914  ;;  %vm1060_vm12 = vcmp.eq.f32.partialorder %v2588_v19, 0.0  ;;  %vm1188_vm11 = vcmp.eq.f32.partialorder %v2591_v46, 0.0 }
 0x1b6   :  { %v1010_v61 = vsel %vm1009_vm15, %v2544_v36, %v1008_v37  ;;  %v965_v42 = vpop.xlane.xlu1 %964 }
 0x1b7   :  { %v1446_v17 = vpop.eup %1445  ;;  %v1013_v0 = vsel %vm1011_vm6, %v1012_v22, %v1010_v61  ;;  %v2613_v33 = vmin.f32 %v2548_v63, %v965_v42 }
 0x1b8   :  { %v1229_v35 = vsub.f32 %v1013_v0, %v1141_v13  ;;  %v1064_v40 = vmul.f32 %v1446_v17, %v2562_v50 }
 0x1b9   :  { %1455 = vrsqrt.f32 %v2613_v33  ;;  %v2621_v9 = vpop.xlane.xlu0 %930  ;;  %vm1151_vm15 = vcmp.eq.f32.partialorder %v2613_v33, inf  ;;  %v1154_v42 = vand.u32 2147483648, %v2613_v33  ;;  %vm1153_vm6 = vcmp.eq.f32.partialorder %v2613_v33, 0.0 }
 0x1ba   :  { %v1245_v47 = vadd.f32 1.0, %v1229_v35  ;;  %v1066_v26 = vsel %vm1065_vm0, %v2562_v50, %v1064_v40  ;;  %v981_v34 = vpop.xlane.xlu1 %980 }
 0x1bb   :  { %v1069_v20 = vsel %vm1067_vm3, %v1068_v15, %v1066_v26  ;;  %v2627_v16 = vmin.f32 %v2566_v7, %v981_v34 }
 0x1bc   :  { %v1448_v39 = vpop.eup %1447  ;;  %v1261_v36 = vmax.f32 %v1245_v47, 0.0  ;;  %v1237_v52 = vsub.f32 %v1069_v20, %v1197_v45 }
 0x1bd   :  { %v1450_v30 = vpop.eup %1449  ;;  %v1001_v63 = vmul.f32 %v1448_v39, %v2576_v54  ;;  %1457 = vrsqrt.f32 %v2627_v16  ;;  %v2631_v5 = vpop.xlane.xlu0 %868  ;;  %vm1207_vm0 = vcmp.eq.f32.partialorder %v2627_v16, inf  ;;  %vm1209_vm3 = vcmp.eq.f32.partialorder %v2627_v16, 0.0 }
 0x1be   :  { %1278 = vst.msk [vmem:[%s2844_s6 + $0x18] sm:$0xff] %vm1274_vm2, %v1261_v36  ;;  %v1253_v62 = vadd.f32 1.0, %v1237_v52  ;;  %v1129_v1 = vmul.f32 %v1450_v30, %v2579_v25  ;;  %v2639_v41 = vpop.xlane.xlu1 %920  ;;  %1459 = vrsqrt.f32 %v2631_v5  ;;  %vm1023_vm9 = vcmp.eq.f32.partialorder %v2631_v5, inf }
 0x1bf   :  { %v1003_v53 = vsel %vm1002_vm13, %v2576_v54, %v1001_v63  ;;  %v1026_v17 = vand.u32 2147483648, %v2631_v5  ;;  %vm1025_vm4 = vcmp.eq.f32.partialorder %v2631_v5, 0.0 }
 0x1c0   :  { %v1452_v58 = vpop.eup %1451  ;;  %v1269_v23 = vmax.f32 %v1253_v62, 0.0  ;;  %v1131_v28 = vsel %vm1130_vm7, %v2579_v25, %v1129_v1  ;;  %v1006_v55 = vsel %vm1004_vm5, %v1005_v38, %v1003_v53 }
 0x1c1   :  { %v1454_v50 = vpop.eup %1453  ;;  %v1134_v11 = vsel %vm1132_vm1, %v1133_v4, %v1131_v28  ;;  %v1057_v7 = vmul.f32 %v1452_v58, %v2588_v19  ;;  %v2650_v2 = vpop.xlane.xlu0 %884 }
 0x1c2   :  { %1286 = vst.msk [vmem:[%s2844_s6 + $0x58] sm:$0xff] %vm1274_vm2, %v1269_v23  ;;  %v1228_v49 = vsub.f32 %v1006_v55, %v1134_v11  ;;  %v1185_v59 = vmul.f32 %v1454_v50, %v2591_v46  ;;  %v2658_v29 = vpop.xlane.xlu1 %936  ;;  %1461 = vrsqrt.f32 %v2650_v2  ;;  %vm1079_vm8 = vcmp.eq.f32.partialorder %v2650_v2, inf }
 0x1c3   :  { %v1059_v12 = vsel %vm1058_vm14, %v2588_v19, %v1057_v7  ;;  %v1082_v34 = vand.u32 2147483648, %v2650_v2  ;;  %vm1081_vm13 = vcmp.eq.f32.partialorder %v2650_v2, 0.0 }
 0x1c4   :  { %v1244_v8 = vadd.f32 1.0, %v1228_v49  ;;  %v1187_v56 = vsel %vm1186_vm10, %v2591_v46, %v1185_v59  ;;  %v1062_v32 = vsel %vm1060_vm12, %v1061_v6, %v1059_v12 }
 0x1c5   :  { %v1190_v10 = vsel %vm1188_vm11, %v1189_v48, %v1187_v56  ;;  %v963_v54 = vpop.xlane.xlu0 %962 }
 0x1c6   :  { %v1456_v25 = vpop.eup %1455  ;;  %v1260_v14 = vmax.f32 %v1244_v8, 0.0  ;;  %v1236_v24 = vsub.f32 %v1062_v32, %v1190_v10  ;;  %v2668_v43 = vpop.xlane.xlu1 %866  ;;  %v2671_v51 = vmin.f32 %v2606_v3, %v963_v54 }
 0x1c7   :  { %1463 = vrsqrt.f32 %v2668_v43  ;;  %v1150_v19 = vmul.f32 %v1456_v25, %v2613_v33  ;;  %vm1016_vm7 = vcmp.eq.f32.partialorder %v2668_v43, inf  ;;  %vm1018_vm5 = vcmp.eq.f32.partialorder %v2668_v43, 0.0 }
 0x1c8   :  { %1277 = vst.msk [vmem:[%s2844_s6 + $0x10] sm:$0xff] %vm1274_vm2, %v1260_v14  ;;  %v1252_v31 = vadd.f32 1.0, %v1236_v24  ;;  %1465 = vrsqrt.f32 %v2671_v51  ;;  %v1019_v53 = vand.u32 2147483648, %v2668_v43  ;;  %vm1144_vm1 = vcmp.eq.f32.partialorder %v2671_v51, inf }
 0x1c9   :  { %v979_v46 = vpop.xlane.xlu0 %978  ;;  %v1152_v3 = vsel %vm1151_vm15, %v2613_v33, %v1150_v19  ;;  %v1210_v33 = vand.u32 2147483648, %v2627_v16  ;;  %vm1146_vm14 = vcmp.eq.f32.partialorder %v2671_v51, 0.0  ;;  %v1147_v28 = vand.u32 2147483648, %v2671_v51 }
 0x1ca   :  { %v1458_v27 = vpop.eup %1457  ;;  %v1268_v60 = vmax.f32 %v1252_v31, 0.0  ;;  %v2680_v21 = vpop.xlane.xlu1 %882  ;;  %v2683_v37 = vmin.f32 %v2621_v9, %v979_v46  ;;  %v1155_v40 = vsel %vm1153_vm6, %v1154_v42, %v1152_v3 }
 0x1cb   :  { %v1460_v18 = vpop.eup %1459  ;;  %1467 = vrsqrt.f32 %v2680_v21  ;;  %v1206_v22 = vmul.f32 %v1458_v27, %v2627_v16  ;;  %vm1072_vm10 = vcmp.eq.f32.partialorder %v2680_v21, inf  ;;  %vm1074_vm12 = vcmp.eq.f32.partialorder %v2680_v21, 0.0 }
 0x1cc   :  { %1285 = vst.msk [vmem:[%s2844_s6 + $0x50] sm:$0xff] %vm1274_vm2, %v1268_v60  ;;  %v1022_v61 = vmul.f32 %v1460_v18, %v2631_v5  ;;  %1469 = vrsqrt.f32 %v2683_v37  ;;  %v1075_v8 = vand.u32 2147483648, %v2680_v21  ;;  %vm1200_vm11 = vcmp.eq.f32.partialorder %v2683_v37, inf }
 0x1cd   :  { %v919_v13 = vpop.xlane.xlu0 %918  ;;  %v1208_v47 = vsel %vm1207_vm0, %v2627_v16, %v1206_v22  ;;  %v1203_v54 = vand.u32 2147483648, %v2683_v37  ;;  %vm1202_vm15 = vcmp.eq.f32.partialorder %v2683_v37, 0.0 }
 0x1ce   :  { %v1024_v0 = vsel %vm1023_vm9, %v2631_v5, %v1022_v61  ;;  %v969_v35 = vpop.xlane.xlu1 %968  ;;  %v1211_v52 = vsel %vm1209_vm3, %v1210_v33, %v1208_v47 }
 0x1cf   :  { %v1462_v44 = vpop.eup %1461  ;;  %v1027_v57 = vsel %vm1025_vm4, %v1026_v17, %v1024_v0  ;;  %v2703_v15 = vmin.f32 %v2639_v41, %v969_v35 }
 0x1d0   :  { %v1231_v9 = vsub.f32 %v1027_v57, %v1155_v40  ;;  %v1078_v26 = vmul.f32 %v1462_v44, %v2650_v2 }
 0x1d1   :  { %1471 = vrsqrt.f32 %v2703_v15  ;;  %v935_v45 = vpop.xlane.xlu0 %934  ;;  %vm1165_vm9 = vcmp.eq.f32.partialorder %v2703_v15, inf  ;;  %v1168_v17 = vand.u32 2147483648, %v2703_v15  ;;  %vm1167_vm4 = vcmp.eq.f32.partialorder %v2703_v15, 0.0 }
 0x1d2   :  { %v1247_v20 = vadd.f32 1.0, %v1231_v9  ;;  %v1080_v39 = vsel %vm1079_vm8, %v2650_v2, %v1078_v26  ;;  %v985_v36 = vpop.xlane.xlu1 %984 }
 0x1d3   :  { %v1083_v30 = vsel %vm1081_vm13, %v1082_v34, %v1080_v39  ;;  %v2736_v7 = vmin.f32 %v2658_v29, %v985_v36 }
 0x1d4   :  { %v1464_v63 = vpop.eup %1463  ;;  %v1263_v5 = vmax.f32 %v1247_v20, 0.0  ;;  %v1239_v62 = vsub.f32 %v1083_v30, %v1211_v52 }
 0x1d5   :  { %v1466_v1 = vpop.eup %1465  ;;  %v1015_v41 = vmul.f32 %v1464_v63, %v2668_v43  ;;  %v2718_v16 = vpop.xlane.xlu0 %872  ;;  %vm1221_vm3 = vcmp.eq.f32.partialorder %v2736_v7, inf  ;;  %v1224_v39 = vand.u32 2147483648, %v2736_v7 }
 0x1d6   :  { %1280 = vst.msk [vmem:[%s2844_s6 + $0x28] sm:$0xff] %vm1274_vm2, %v1263_v5  ;;  %v1255_v38 = vadd.f32 1.0, %v1239_v62  ;;  %v1143_v4 = vmul.f32 %v1466_v1, %v2671_v51  ;;  %v2726_v58 = vpop.xlane.xlu1 %870  ;;  %1473 = vrsqrt.f32 %v2718_v16  ;;  %vm1037_vm6 = vcmp.eq.f32.partialorder %v2718_v16, inf }
 0x1d7   :  { %v1017_v23 = vsel %vm1016_vm7, %v2668_v43, %v1015_v41  ;;  %1475 = vrsqrt.f32 %v2726_v58  ;;  %vm1039_vm0 = vcmp.eq.f32.partialorder %v2718_v16, 0.0  ;;  %vm1030_vm8 = vcmp.eq.f32.partialorder %v2726_v58, inf }
 0x1d8   :  { %v1468_v50 = vpop.eup %1467  ;;  %v1271_v55 = vmax.f32 %v1255_v38, 0.0  ;;  %v1145_v11 = vsel %vm1144_vm1, %v2671_v51, %v1143_v4  ;;  %v1020_v49 = vsel %vm1018_vm5, %v1019_v53, %v1017_v23  ;;  %vm1032_vm13 = vcmp.eq.f32.partialorder %v2726_v58, 0.0 }
 0x1d9   :  { %v1470_v2 = vpop.eup %1469  ;;  %v1148_v59 = vsel %vm1146_vm14, %v1147_v28, %v1145_v11  ;;  %v1071_v12 = vmul.f32 %v1468_v50, %v2680_v21  ;;  %v967_v6 = vpop.xlane.xlu0 %966 }
 0x1da   :  { %1288 = vst.msk [vmem:[%s2844_s6 + $0x68] sm:$0xff] %vm1274_vm2, %v1271_v55  ;;  %v1230_v48 = vsub.f32 %v1020_v49, %v1148_v59  ;;  %v1199_v29 = vmul.f32 %v1470_v2, %v2683_v37  ;;  %v2748_v56 = vpop.xlane.xlu1 %886  ;;  %v2750_v32 = vmin.f32 %v919_v13, %v967_v6  ;;  %v1040_v13 = vand.u32 2147483648, %v2718_v16 }
 0x1db   :  { %v1073_v10 = vsel %vm1072_vm10, %v2680_v21, %v1071_v12  ;;  %1477 = vrsqrt.f32 %v2748_v56  ;;  %vm1086_vm7 = vcmp.eq.f32.partialorder %v2748_v56, inf  ;;  %vm1088_vm1 = vcmp.eq.f32.partialorder %v2748_v56, 0.0 }
 0x1dc   :  { %v1246_v25 = vadd.f32 1.0, %v1230_v48  ;;  %v1201_v14 = vsel %vm1200_vm11, %v2683_v37, %v1199_v29  ;;  %1479 = vrsqrt.f32 %v2736_v7  ;;  %v1076_v24 = vsel %vm1074_vm12, %v1075_v8, %v1073_v10 }
 0x1dd   :  { %v1204_v43 = vsel %vm1202_vm15, %v1203_v54, %v1201_v14  ;;  %1481 = vrsqrt.f32 %v2750_v32  ;;  %v983_v51 = vpop.xlane.xlu0 %982  ;;  %vm1158_vm5 = vcmp.eq.f32.partialorder %v2750_v32, inf  ;;  %v1161_v30 = vand.u32 2147483648, %v2750_v32 }
 0x1de   :  { %v1472_v31 = vpop.eup %1471  ;;  %v1262_v19 = vmax.f32 %v1246_v25, 0.0  ;;  %v1238_v46 = vsub.f32 %v1076_v24, %v1204_v43  ;;  %v2762_v27 = vmin.f32 %v935_v45, %v983_v51  ;;  %v1089_v5 = vand.u32 2147483648, %v2748_v56 }
 0x1df   :  { %v1164_v37 = vmul.f32 %v1472_v31, %v2703_v15  ;;  %vm1160_vm14 = vcmp.eq.f32.partialorder %v2750_v32, 0.0  ;;  %vm1223_vm15 = vcmp.eq.f32.partialorder %v2736_v7, 0.0 }
 0x1e0   :  { %1279 = vst.msk [vmem:[%s2844_s6 + $0x20] sm:$0xff] %vm1274_vm2, %v1262_v19  ;;  %v1254_v60 = vadd.f32 1.0, %v1238_v46  ;;  %1483 = vrsqrt.f32 %v2762_v27  ;;  %vm1214_vm10 = vcmp.eq.f32.partialorder %v2762_v27, inf  ;;  %vm1216_vm12 = vcmp.eq.f32.partialorder %v2762_v27, 0.0 }
 0x1e1   :  { %v2770_v21 = vpop.xlane.xlu0 %888  ;;  %v1166_v61 = vsel %vm1165_vm9, %v2703_v15, %v1164_v37  ;;  %v1033_v15 = vand.u32 2147483648, %v2726_v58  ;;  %v1217_v23 = vand.u32 2147483648, %v2762_v27 }
 0x1e2   :  { %v1270_v18 = vmax.f32 %v1254_v60, 0.0  ;;  %1485 = vrsqrt.f32 %v2770_v21  ;;  %v1169_v44 = vsel %vm1167_vm4, %v1168_v17, %v1166_v61  ;;  %vm1093_vm11 = vcmp.eq.f32.partialorder %v2770_v21, inf }
 0x1e3   :  { %v1474_v22 = vpop.eup %1473  ;;  %v1096_v49 = vand.u32 2147483648, %v2770_v21  ;;  %vm1095_vm9 = vcmp.eq.f32.partialorder %v2770_v21, 0.0 }
 0x1e4   :  { %v1476_v3 = vpop.eup %1475  ;;  %1287 = vst.msk [vmem:[%s2844_s6 + $0x60] sm:$0xff] %vm1274_vm2, %v1270_v18  ;;  %v1036_v42 = vmul.f32 %v1474_v22, %v2718_v16 }
 0x1e5   :  { %v1029_v35 = vmul.f32 %v1476_v3, %v2726_v58 }
 0x1e6   :  { %v1038_v0 = vsel %vm1037_vm6, %v2718_v16, %v1036_v42 }
 0x1e7   :  { %v1041_v40 = vsel %vm1039_vm0, %v1040_v13, %v1038_v0  ;;  %v1031_v45 = vsel %vm1030_vm8, %v2726_v58, %v1029_v35 }
 0x1e8   :  { %v1478_v57 = vpop.eup %1477  ;;  %v1233_v9 = vsub.f32 %v1041_v40, %v1169_v44  ;;  %v1034_v1 = vsel %vm1032_vm13, %v1033_v15, %v1031_v45 }
 0x1e9   :  { %v1480_v47 = vpop.eup %1479  ;;  %v1085_v34 = vmul.f32 %v1478_v57, %v2748_v56 }
 0x1ea   :  { %v1482_v26 = vpop.eup %1481  ;;  %v1249_v33 = vadd.f32 1.0, %v1233_v9  ;;  %v1220_v36 = vmul.f32 %v1480_v47, %v2736_v7 }
 0x1eb   :  { %v1157_v20 = vmul.f32 %v1482_v26, %v2750_v32  ;;  %v1087_v41 = vsel %vm1086_vm7, %v2748_v56, %v1085_v34 }
 0x1ec   :  { %v1265_v52 = vmax.f32 %v1249_v33, 0.0  ;;  %v1222_v28 = vsel %vm1221_vm3, %v2736_v7, %v1220_v36  ;;  %v1090_v55 = vsel %vm1088_vm1, %v1089_v5, %v1087_v41 }
 0x1ed   :  { %v1484_v63 = vpop.eup %1483  ;;  %v1159_v62 = vsel %vm1158_vm5, %v2750_v32, %v1157_v20  ;;  %v1225_v48 = vsel %vm1223_vm15, %v1224_v39, %v1222_v28 }
 0x1ee   :  { %1282 = vst.msk [vmem:[%s2844_s6 + $0x38] sm:$0xff] %vm1274_vm2, %v1265_v52  ;;  %v1162_v53 = vsel %vm1160_vm14, %v1161_v30, %v1159_v62  ;;  %v1213_v16 = vmul.f32 %v1484_v63, %v2762_v27 }
 0x1ef   :  { %v1486_v38 = vpop.eup %1485  ;;  %v1232_v4 = vsub.f32 %v1034_v1, %v1162_v53 }
 0x1f0   :  { %v1215_v58 = vsel %vm1214_vm10, %v2762_v27, %v1213_v16  ;;  %v1092_v50 = vmul.f32 %v1486_v38, %v2770_v21 }
 0x1f1   :  { %v1248_v11 = vadd.f32 1.0, %v1232_v4  ;;  %v1218_v2 = vsel %vm1216_vm12, %v1217_v23, %v1215_v58 }
 0x1f2   :  { %v1240_v59 = vsub.f32 %v1090_v55, %v1218_v2  ;;  %v1094_v12 = vsel %vm1093_vm11, %v2770_v21, %v1092_v50 }
 0x1f3   :  { %v1264_v6 = vmax.f32 %v1248_v11, 0.0  ;;  %v1097_v8 = vsel %vm1095_vm9, %v1096_v49, %v1094_v12 }
 0x1f4   :  { %v1256_v29 = vadd.f32 1.0, %v1240_v59  ;;  %v1241_v32 = vsub.f32 %v1097_v8, %v1225_v48 }
 0x1f5   :  { %1281 = vst.msk [vmem:[%s2844_s6 + $0x30] sm:$0xff] %vm1274_vm2, %v1264_v6 }
 0x1f6   :  { %v1272_v56 = vmax.f32 %v1256_v29, 0.0  ;;  %v1257_v10 = vadd.f32 1.0, %v1241_v32 }
 0x1f8   :  { %1289 = vst.msk [vmem:[%s2844_s6 + $0x70] sm:$0xff] %vm1274_vm2, %v1272_v56  ;;  %v1273_v7 = vmax.f32 %v1257_v10, 0.0 }
 0x1fa   :  { %1290 = vst.msk [vmem:[%s2844_s6 + $0x78] sm:$0xff] %vm1274_vm2, %v1273_v7 }

</bundles_post_ra>
